<compile_context>
chip_gen: v7x
topology: tpu7x:2x2x1
jax: 0.10.0
libtpu: 0.0.40
codegen_flags: <defaults>
</compile_context>

<pallas_src>
import functools

import jax
import jax.numpy as jnp
from jax.experimental import pallas as pl
from jax.experimental.pallas import tpu as pltpu


def _round_up(a: int, b: int) -> int:
    return (a + b - 1) // b * b


def _conv_bias_relu_kernel(x_ref, w_ref, b_ref, o_ref, *,
                           KH, KW, TH, WQ, apply_relu):
    """One (batch, row-block, cout-block) tile per grid step.

    x_ref: (1, Hp_pad, Wp_pad, Cin)  zero-padded NHWC input (bf16), resident
                                     across the row/Cout grid axes.
    w_ref: (KH, KW, Cin, TCout)      conv weight tile (bf16).
    b_ref: (1, TCout)                bias tile (f32).
    o_ref: (1, TH, WQ, TCout)        output tile (lane-dense TCout).
    """
    Cin = x_ref.shape[-1]
    TCo = o_ref.shape[-1]

    # First padded-input row feeding this output-row block.
    h0 = pl.multiple_of(pl.program_id(1) * TH, TH)

    # f32 accumulator held as a value; sized (TH*WQ, TCout) so it stays a
    # small vreg/VMEM-resident tile instead of a full-image accumulator.
    acc = jnp.zeros((TH * WQ, TCo), jnp.float32)

    # Conv as a sum of shifted-row-band matmuls.  Each tap slices a full-width
    # (TH, WQ, Cin) band: the W slice length WQ is a multiple of 8, so the
    # reshape to (TH*WQ, Cin) is layout-preserving (no strided-window copy),
    # and the matmul runs bf16 x bf16 -> f32 on the MXU.
    for kh in range(KH):
        for kw in range(KW):
            band = x_ref[0, pl.ds(h0 + kh, TH), pl.ds(kw, WQ), :]  # (TH, WQ, Cin)
            acc = acc + jnp.dot(band.reshape(TH * WQ, Cin),
                                w_ref[kh, kw],
                                preferred_element_type=jnp.float32)

    acc = acc + b_ref[...]            # (TH*WQ, TCout) + (1, TCout), f32
    if apply_relu:
        acc = jnp.maximum(acc, 0.0)

    o_ref[...] = acc.reshape(1, TH, WQ, TCo).astype(o_ref.dtype)


def conv_module_forward(x_nchw, weight_oihw, bias, *, padding=1,
                        activate=True, norm=True,
                        row_tile=32, cout_tile=128,
                        compute_dtype=jnp.bfloat16):
    """ConvModule.forward: x -> Conv2d -> (no norm) -> ReLU.

    x_nchw:      (N, Cin, H, W)      -- PyTorch NCHW input
    weight_oihw: (Cout, Cin, KH, KW) -- PyTorch Conv2d weight layout
    bias:        (Cout,)
    Returns NCHW output, matching nn.Conv2d(stride=1, dilation=1, groups=1)
    followed by ReLU (f32-accumulated, bf16 MXU operands).
    """
    del norm  # ConvModule has no norm layer under the default config.
    N, Cin, H, W = x_nchw.shape
    Cout, Cin_w, KH, KW = weight_oihw.shape
    assert Cin == Cin_w, "groups != 1 not supported"

    # True conv output extents (stride=1, dilation=1).
    Ho = H + 2 * padding - KH + 1
    Wo = W + 2 * padding - KW + 1

    # Tiling / padding plan.
    TCo = min(cout_tile, _round_up(Cout, 128))        # lane-dense Cout tile
    Cout_pad = _round_up(Cout, TCo)
    TH = min(row_tile, Ho)                             # output-row tile
    Ho_pad = _round_up(Ho, TH)
    WQ = _round_up(Wo, 8)                              # stored output width
    Hp_pad = Ho_pad + KH - 1                           # padded input extents
    Wp_pad = WQ + KW - 1

    # NCHW -> NHWC; conv zero-padding plus alignment padding in one pad; bf16.
    # TODO(synk): padding is still materialized in HBM; could be folded into
    # the kernel's DMA with a zero-initialized VMEM scratch + masked edges.
    x = jnp.transpose(x_nchw, (0, 2, 3, 1))
    x = jnp.pad(x, ((0, 0),
                    (padding, Hp_pad - H - padding),
                    (padding, Wp_pad - W - padding),
                    (0, 0)))
    x = x.astype(compute_dtype)

    # OIHW -> (KH, KW, Cin, Cout_pad): each tap is a ready (Cin, Cout) matmul
    # operand; Cout zero-padded to the lane-dense tile.  (Static per model —
    # in a real deployment this transpose/pad would be done once offline.)
    w = jnp.transpose(weight_oihw, (2, 3, 1, 0))
    w = jnp.pad(w, ((0, 0), (0, 0), (0, 0), (0, Cout_pad - Cout)))
    w = w.astype(compute_dtype)
    b = jnp.pad(bias.astype(jnp.float32), (0, Cout_pad - Cout)).reshape(1, Cout_pad)

    grid = (N, Ho_pad // TH, Cout_pad // TCo)

    kernel = functools.partial(
        _conv_bias_relu_kernel,
        KH=KH, KW=KW, TH=TH, WQ=WQ, apply_relu=bool(activate),
    )

    out_nhwc = pl.pallas_call(
        kernel,
        out_shape=jax.ShapeDtypeStruct((N, Ho_pad, WQ, Cout_pad), x_nchw.dtype),
        grid_spec=pltpu.PrefetchScalarGridSpec(
            num_scalar_prefetch=0,
            grid=grid,
            in_specs=[
                # Full padded image per batch element; block index is constant
                # across the row/Cout axes so it is only re-DMA'd when n changes.
                pl.BlockSpec((1, Hp_pad, Wp_pad, Cin), lambda n, h, c: (n, 0, 0, 0)),
                # Weight tile over Cout; bias tile over Cout.
                pl.BlockSpec((KH, KW, Cin, TCo), lambda n, h, c: (0, 0, 0, c)),
                pl.BlockSpec((1, TCo), lambda n, h, c: (0, c)),
            ],
            out_specs=pl.BlockSpec((1, TH, WQ, TCo), lambda n, h, c: (n, h, 0, c)),
        ),
        compiler_params=pltpu.CompilerParams(
            # Every grid point writes a distinct output tile -> all parallel
            # (lets v7x split row/Cout blocks across its two TensorCores).
            dimension_semantics=("parallel", "parallel", "parallel"),
            # Explicit budget below v7x's 64 MiB physical VMEM.
            vmem_limit_bytes=48 * 1024 * 1024,
        ),
    )(x, w, b)

    # Crop alignment padding, NHWC -> NCHW.
    out_nhwc = out_nhwc[:, :Ho, :Wo, :Cout]
    return jnp.transpose(out_nhwc, (0, 3, 1, 2))


def _reference(x_nchw, weight_oihw, bias, padding):
    """Pure-JAX reference: conv2d + bias + ReLU (NCHW, OIHW, f32)."""
    y = jax.lax.conv_general_dilated(
        x_nchw, weight_oihw,
        window_strides=(1, 1),
        padding=[(padding, padding), (padding, padding)],
        dimension_numbers=("NCHW", "OIHW", "NCHW"),
    )
    y = y + bias[None, :, None, None]
    return jnp.maximum(y, 0.0)


if __name__ == "__main__":
    # Small shapes consistent with the module:
    # ConvModule(in_channels=4, out_channels=8, kernel_size=3, padding=1)
    N, Cin, H, W = 2, 4, 16, 16
    Cout, KH, KW = 8, 3, 3
    padding = 1

    key = jax.random.PRNGKey(0)
    kx, kw, kb = jax.random.split(key, 3)
    x = jax.random.normal(kx, (N, Cin, H, W), dtype=jnp.float32)
    weight = jax.random.normal(kw, (Cout, Cin, KH, KW), dtype=jnp.float32) * 0.1
    bias = jax.random.normal(kb, (Cout,), dtype=jnp.float32) * 0.1

    # row_tile=8 so the demo exercises multiple output-row blocks.
    out = conv_module_forward(x, weight, bias, padding=padding,
                              activate=True, row_tile=8, cout_tile=128)
    out = jax.block_until_ready(out)

    ref = _reference(x, weight, bias, padding)
    assert out.shape == ref.shape == (N, Cout, H, W)
    # bf16 MXU operands with f32 accumulation -> usual bf16 conv tolerance.
    assert jnp.allclose(out, ref, atol=2e-2, rtol=2e-2), (
        f"max abs err = {jnp.max(jnp.abs(out - ref))}")

    print("KERNEL_OK")
</pallas_src>

<mosaic_0001>
module attributes {stable_mosaic.version = 11 : i64} {
  func.func @_conv_bias_relu_kernel(%arg0: i32, %arg1: i32, %arg2: i32, %arg3: memref<1x18x18x4xbf16, #tpu.memory_space<vmem>>, %arg4: memref<3x3x4x128xbf16, #tpu.memory_space<vmem>>, %arg5: memref<1x128xf32, #tpu.memory_space<vmem>>, %arg6: memref<1x8x16x128xf32, #tpu.memory_space<vmem>>) attributes {dimension_semantics = [#tpu.dimension_semantics<parallel>, #tpu.dimension_semantics<parallel>, #tpu.dimension_semantics<parallel>], iteration_bounds = array<i64: 2, 2, 1>, scalar_prefetch = 0 : i64, scratch_operands = 0 : i64, tpu.core_type = #tpu.core_type<tc>, window_params = [{transform_indices = @transform_0, window_bounds = array<i64: 1, 18, 18, 4>}, {transform_indices = @transform_1, window_bounds = array<i64: 3, 3, 4, 128>}, {transform_indices = @transform_2, window_bounds = array<i64: 1, 128>}, {transform_indices = @transform_3, window_bounds = array<i64: 1, 8, 16, 128>}]} {
    %c8_i32 = arith.constant 8 : i32
    %0 = arith.muli %arg1, %c8_i32 : i32
    %1 = tpu.assume_multiple %0, 8 : i32
    %cst = arith.constant 0.000000e+00 : f32
    %2 = vector.broadcast %cst : f32 to vector<128x128xf32>
    %c0_i32 = arith.constant 0 : i32
    %3 = arith.addi %1, %c0_i32 : i32
    %c0 = arith.constant 0 : index
    %4 = arith.index_cast %3 : i32 to index
    %c0_0 = arith.constant 0 : index
    %c0_1 = arith.constant 0 : index
    %5 = vector.load %arg3[%c0, %4, %c0_0, %c0_1] : memref<1x18x18x4xbf16, #tpu.memory_space<vmem>>, vector<1x8x16x4xbf16>
    %6 = vector.shape_cast %5 : vector<1x8x16x4xbf16> to vector<8x16x4xbf16>
    %7 = vector.shape_cast %6 : vector<8x16x4xbf16> to vector<128x4xbf16>
    %c0_2 = arith.constant 0 : index
    %c0_3 = arith.constant 0 : index
    %c0_4 = arith.constant 0 : index
    %c0_5 = arith.constant 0 : index
    %8 = vector.load %arg4[%c0_2, %c0_3, %c0_4, %c0_5] : memref<3x3x4x128xbf16, #tpu.memory_space<vmem>>, vector<1x1x4x128xbf16>
    %9 = vector.shape_cast %8 : vector<1x1x4x128xbf16> to vector<4x128xbf16>
    %cst_6 = arith.constant dense<0.000000e+00> : vector<128x128xf32>
    %10 = tpu.matmul %7, %9, %cst_6 {dimension_numbers = #tpu.dot_dimension_numbers<[1], [0], [0], [1], [0, 0, 1, 1], [], []>} : vector<128x4xbf16>, vector<4x128xbf16>, vector<128x128xf32> -> vector<128x128xf32>
    %11 = arith.addf %2, %10 : vector<128x128xf32>
    %c0_i32_7 = arith.constant 0 : i32
    %12 = arith.addi %1, %c0_i32_7 : i32
    %c0_8 = arith.constant 0 : index
    %13 = arith.index_cast %12 : i32 to index
    %c1 = arith.constant 1 : index
    %c0_9 = arith.constant 0 : index
    %14 = vector.load %arg3[%c0_8, %13, %c1, %c0_9] : memref<1x18x18x4xbf16, #tpu.memory_space<vmem>>, vector<1x8x16x4xbf16>
    %15 = vector.shape_cast %14 : vector<1x8x16x4xbf16> to vector<8x16x4xbf16>
    %16 = vector.shape_cast %15 : vector<8x16x4xbf16> to vector<128x4xbf16>
    %c0_10 = arith.constant 0 : index
    %c1_11 = arith.constant 1 : index
    %c0_12 = arith.constant 0 : index
    %c0_13 = arith.constant 0 : index
    %17 = vector.load %arg4[%c0_10, %c1_11, %c0_12, %c0_13] : memref<3x3x4x128xbf16, #tpu.memory_space<vmem>>, vector<1x1x4x128xbf16>
    %18 = vector.shape_cast %17 : vector<1x1x4x128xbf16> to vector<4x128xbf16>
    %cst_14 = arith.constant dense<0.000000e+00> : vector<128x128xf32>
    %19 = tpu.matmul %16, %18, %cst_14 {dimension_numbers = #tpu.dot_dimension_numbers<[1], [0], [0], [1], [0, 0, 1, 1], [], []>} : vector<128x4xbf16>, vector<4x128xbf16>, vector<128x128xf32> -> vector<128x128xf32>
    %20 = arith.addf %11, %19 : vector<128x128xf32>
    %c0_i32_15 = arith.constant 0 : i32
    %21 = arith.addi %1, %c0_i32_15 : i32
    %c0_16 = arith.constant 0 : index
    %22 = arith.index_cast %21 : i32 to index
    %c2 = arith.constant 2 : index
    %c0_17 = arith.constant 0 : index
    %23 = vector.load %arg3[%c0_16, %22, %c2, %c0_17] : memref<1x18x18x4xbf16, #tpu.memory_space<vmem>>, vector<1x8x16x4xbf16>
    %24 = vector.shape_cast %23 : vector<1x8x16x4xbf16> to vector<8x16x4xbf16>
    %25 = vector.shape_cast %24 : vector<8x16x4xbf16> to vector<128x4xbf16>
    %c0_18 = arith.constant 0 : index
    %c2_19 = arith.constant 2 : index
    %c0_20 = arith.constant 0 : index
    %c0_21 = arith.constant 0 : index
    %26 = vector.load %arg4[%c0_18, %c2_19, %c0_20, %c0_21] : memref<3x3x4x128xbf16, #tpu.memory_space<vmem>>, vector<1x1x4x128xbf16>
    %27 = vector.shape_cast %26 : vector<1x1x4x128xbf16> to vector<4x128xbf16>
    %cst_22 = arith.constant dense<0.000000e+00> : vector<128x128xf32>
    %28 = tpu.matmul %25, %27, %cst_22 {dimension_numbers = #tpu.dot_dimension_numbers<[1], [0], [0], [1], [0, 0, 1, 1], [], []>} : vector<128x4xbf16>, vector<4x128xbf16>, vector<128x128xf32> -> vector<128x128xf32>
    %29 = arith.addf %20, %28 : vector<128x128xf32>
    %c1_i32 = arith.constant 1 : i32
    %30 = arith.addi %1, %c1_i32 : i32
    %c0_23 = arith.constant 0 : index
    %31 = arith.index_cast %30 : i32 to index
    %c0_24 = arith.constant 0 : index
    %c0_25 = arith.constant 0 : index
    %32 = vector.load %arg3[%c0_23, %31, %c0_24, %c0_25] : memref<1x18x18x4xbf16, #tpu.memory_space<vmem>>, vector<1x8x16x4xbf16>
    %33 = vector.shape_cast %32 : vector<1x8x16x4xbf16> to vector<8x16x4xbf16>
    %34 = vector.shape_cast %33 : vector<8x16x4xbf16> to vector<128x4xbf16>
    %c1_26 = arith.constant 1 : index
    %c0_27 = arith.constant 0 : index
    %c0_28 = arith.constant 0 : index
    %c0_29 = arith.constant 0 : index
    %35 = vector.load %arg4[%c1_26, %c0_27, %c0_28, %c0_29] : memref<3x3x4x128xbf16, #tpu.memory_space<vmem>>, vector<1x1x4x128xbf16>
    %36 = vector.shape_cast %35 : vector<1x1x4x128xbf16> to vector<4x128xbf16>
    %cst_30 = arith.constant dense<0.000000e+00> : vector<128x128xf32>
    %37 = tpu.matmul %34, %36, %cst_30 {dimension_numbers = #tpu.dot_dimension_numbers<[1], [0], [0], [1], [0, 0, 1, 1], [], []>} : vector<128x4xbf16>, vector<4x128xbf16>, vector<128x128xf32> -> vector<128x128xf32>
    %38 = arith.addf %29, %37 : vector<128x128xf32>
    %c1_i32_31 = arith.constant 1 : i32
    %39 = arith.addi %1, %c1_i32_31 : i32
    %c0_32 = arith.constant 0 : index
    %40 = arith.index_cast %39 : i32 to index
    %c1_33 = arith.constant 1 : index
    %c0_34 = arith.constant 0 : index
    %41 = vector.load %arg3[%c0_32, %40, %c1_33, %c0_34] : memref<1x18x18x4xbf16, #tpu.memory_space<vmem>>, vector<1x8x16x4xbf16>
    %42 = vector.shape_cast %41 : vector<1x8x16x4xbf16> to vector<8x16x4xbf16>
    %43 = vector.shape_cast %42 : vector<8x16x4xbf16> to vector<128x4xbf16>
    %c1_35 = arith.constant 1 : index
    %c1_36 = arith.constant 1 : index
    %c0_37 = arith.constant 0 : index
    %c0_38 = arith.constant 0 : index
    %44 = vector.load %arg4[%c1_35, %c1_36, %c0_37, %c0_38] : memref<3x3x4x128xbf16, #tpu.memory_space<vmem>>, vector<1x1x4x128xbf16>
    %45 = vector.shape_cast %44 : vector<1x1x4x128xbf16> to vector<4x128xbf16>
    %cst_39 = arith.constant dense<0.000000e+00> : vector<128x128xf32>
    %46 = tpu.matmul %43, %45, %cst_39 {dimension_numbers = #tpu.dot_dimension_numbers<[1], [0], [0], [1], [0, 0, 1, 1], [], []>} : vector<128x4xbf16>, vector<4x128xbf16>, vector<128x128xf32> -> vector<128x128xf32>
    %47 = arith.addf %38, %46 : vector<128x128xf32>
    %c1_i32_40 = arith.constant 1 : i32
    %48 = arith.addi %1, %c1_i32_40 : i32
    %c0_41 = arith.constant 0 : index
    %49 = arith.index_cast %48 : i32 to index
    %c2_42 = arith.constant 2 : index
    %c0_43 = arith.constant 0 : index
    %50 = vector.load %arg3[%c0_41, %49, %c2_42, %c0_43] : memref<1x18x18x4xbf16, #tpu.memory_space<vmem>>, vector<1x8x16x4xbf16>
    %51 = vector.shape_cast %50 : vector<1x8x16x4xbf16> to vector<8x16x4xbf16>
    %52 = vector.shape_cast %51 : vector<8x16x4xbf16> to vector<128x4xbf16>
    %c1_44 = arith.constant 1 : index
    %c2_45 = arith.constant 2 : index
    %c0_46 = arith.constant 0 : index
    %c0_47 = arith.constant 0 : index
    %53 = vector.load %arg4[%c1_44, %c2_45, %c0_46, %c0_47] : memref<3x3x4x128xbf16, #tpu.memory_space<vmem>>, vector<1x1x4x128xbf16>
    %54 = vector.shape_cast %53 : vector<1x1x4x128xbf16> to vector<4x128xbf16>
    %cst_48 = arith.constant dense<0.000000e+00> : vector<128x128xf32>
    %55 = tpu.matmul %52, %54, %cst_48 {dimension_numbers = #tpu.dot_dimension_numbers<[1], [0], [0], [1], [0, 0, 1, 1], [], []>} : vector<128x4xbf16>, vector<4x128xbf16>, vector<128x128xf32> -> vector<128x128xf32>
    %56 = arith.addf %47, %55 : vector<128x128xf32>
    %c2_i32 = arith.constant 2 : i32
    %57 = arith.addi %1, %c2_i32 : i32
    %c0_49 = arith.constant 0 : index
    %58 = arith.index_cast %57 : i32 to index
    %c0_50 = arith.constant 0 : index
    %c0_51 = arith.constant 0 : index
    %59 = vector.load %arg3[%c0_49, %58, %c0_50, %c0_51] : memref<1x18x18x4xbf16, #tpu.memory_space<vmem>>, vector<1x8x16x4xbf16>
    %60 = vector.shape_cast %59 : vector<1x8x16x4xbf16> to vector<8x16x4xbf16>
    %61 = vector.shape_cast %60 : vector<8x16x4xbf16> to vector<128x4xbf16>
    %c2_52 = arith.constant 2 : index
    %c0_53 = arith.constant 0 : index
    %c0_54 = arith.constant 0 : index
    %c0_55 = arith.constant 0 : index
    %62 = vector.load %arg4[%c2_52, %c0_53, %c0_54, %c0_55] : memref<3x3x4x128xbf16, #tpu.memory_space<vmem>>, vector<1x1x4x128xbf16>
    %63 = vector.shape_cast %62 : vector<1x1x4x128xbf16> to vector<4x128xbf16>
    %cst_56 = arith.constant dense<0.000000e+00> : vector<128x128xf32>
    %64 = tpu.matmul %61, %63, %cst_56 {dimension_numbers = #tpu.dot_dimension_numbers<[1], [0], [0], [1], [0, 0, 1, 1], [], []>} : vector<128x4xbf16>, vector<4x128xbf16>, vector<128x128xf32> -> vector<128x128xf32>
    %65 = arith.addf %56, %64 : vector<128x128xf32>
    %c2_i32_57 = arith.constant 2 : i32
    %66 = arith.addi %1, %c2_i32_57 : i32
    %c0_58 = arith.constant 0 : index
    %67 = arith.index_cast %66 : i32 to index
    %c1_59 = arith.constant 1 : index
    %c0_60 = arith.constant 0 : index
    %68 = vector.load %arg3[%c0_58, %67, %c1_59, %c0_60] : memref<1x18x18x4xbf16, #tpu.memory_space<vmem>>, vector<1x8x16x4xbf16>
    %69 = vector.shape_cast %68 : vector<1x8x16x4xbf16> to vector<8x16x4xbf16>
    %70 = vector.shape_cast %69 : vector<8x16x4xbf16> to vector<128x4xbf16>
    %c2_61 = arith.constant 2 : index
    %c1_62 = arith.constant 1 : index
    %c0_63 = arith.constant 0 : index
    %c0_64 = arith.constant 0 : index
    %71 = vector.load %arg4[%c2_61, %c1_62, %c0_63, %c0_64] : memref<3x3x4x128xbf16, #tpu.memory_space<vmem>>, vector<1x1x4x128xbf16>
    %72 = vector.shape_cast %71 : vector<1x1x4x128xbf16> to vector<4x128xbf16>
    %cst_65 = arith.constant dense<0.000000e+00> : vector<128x128xf32>
    %73 = tpu.matmul %70, %72, %cst_65 {dimension_numbers = #tpu.dot_dimension_numbers<[1], [0], [0], [1], [0, 0, 1, 1], [], []>} : vector<128x4xbf16>, vector<4x128xbf16>, vector<128x128xf32> -> vector<128x128xf32>
    %74 = arith.addf %65, %73 : vector<128x128xf32>
    %c2_i32_66 = arith.constant 2 : i32
    %75 = arith.addi %1, %c2_i32_66 : i32
    %c0_67 = arith.constant 0 : index
    %76 = arith.index_cast %75 : i32 to index
    %c2_68 = arith.constant 2 : index
    %c0_69 = arith.constant 0 : index
    %77 = vector.load %arg3[%c0_67, %76, %c2_68, %c0_69] : memref<1x18x18x4xbf16, #tpu.memory_space<vmem>>, vector<1x8x16x4xbf16>
    %78 = vector.shape_cast %77 : vector<1x8x16x4xbf16> to vector<8x16x4xbf16>
    %79 = vector.shape_cast %78 : vector<8x16x4xbf16> to vector<128x4xbf16>
    %c2_70 = arith.constant 2 : index
    %c2_71 = arith.constant 2 : index
    %c0_72 = arith.constant 0 : index
    %c0_73 = arith.constant 0 : index
    %80 = vector.load %arg4[%c2_70, %c2_71, %c0_72, %c0_73] : memref<3x3x4x128xbf16, #tpu.memory_space<vmem>>, vector<1x1x4x128xbf16>
    %81 = vector.shape_cast %80 : vector<1x1x4x128xbf16> to vector<4x128xbf16>
    %cst_74 = arith.constant dense<0.000000e+00> : vector<128x128xf32>
    %82 = tpu.matmul %79, %81, %cst_74 {dimension_numbers = #tpu.dot_dimension_numbers<[1], [0], [0], [1], [0, 0, 1, 1], [], []>} : vector<128x4xbf16>, vector<4x128xbf16>, vector<128x128xf32> -> vector<128x128xf32>
    %83 = arith.addf %74, %82 : vector<128x128xf32>
    %c0_75 = arith.constant 0 : index
    %c0_76 = arith.constant 0 : index
    %84 = vector.load %arg5[%c0_75, %c0_76] : memref<1x128xf32, #tpu.memory_space<vmem>>, vector<1x128xf32>
    %85 = vector.broadcast %84 : vector<1x128xf32> to vector<128x128xf32>
    %86 = arith.addf %83, %85 : vector<128x128xf32>
    %cst_77 = arith.constant 0.000000e+00 : f32
    %87 = vector.broadcast %cst_77 : f32 to vector<128x128xf32>
    %88 = arith.maximumf %86, %87 : vector<128x128xf32>
    %89 = vector.shape_cast %88 : vector<128x128xf32> to vector<1x8x16x128xf32>
    %c0_78 = arith.constant 0 : index
    %c0_79 = arith.constant 0 : index
    %c0_80 = arith.constant 0 : index
    %c0_81 = arith.constant 0 : index
    %90 = vector.load %arg6[%c0_78, %c0_79, %c0_80, %c0_81] : memref<1x8x16x128xf32, #tpu.memory_space<vmem>>, vector<1x8x16x128xf32>
    tpu.vector_store %arg6[%c0_78, %c0_79, %c0_80, %c0_81], %89 {strides = array<i32>} : memref<1x8x16x128xf32, #tpu.memory_space<vmem>>, vector<1x8x16x128xf32>,
    return
  }
  func.func @transform_0(%arg0: i32, %arg1: i32, %arg2: i32) -> (i32, i32, i32, i32) {
    %c0_i32 = arith.constant 0 : i32
    %c0_i32_0 = arith.constant 0 : i32
    %c0_i32_1 = arith.constant 0 : i32
    %c0_i32_2 = arith.constant 0 : i32
    return %arg0, %c0_i32, %c0_i32_0, %c0_i32_1 : i32, i32, i32, i32
  }
  func.func @transform_1(%arg0: i32, %arg1: i32, %arg2: i32) -> (i32, i32, i32, i32) {
    %c0_i32 = arith.constant 0 : i32
    %c0_i32_0 = arith.constant 0 : i32
    %c0_i32_1 = arith.constant 0 : i32
    %c0_i32_2 = arith.constant 0 : i32
    return %c0_i32, %c0_i32_0, %c0_i32_1, %arg2 : i32, i32, i32, i32
  }
  func.func @transform_2(%arg0: i32, %arg1: i32, %arg2: i32) -> (i32, i32) {
    %c0_i32 = arith.constant 0 : i32
    %c0_i32_0 = arith.constant 0 : i32
    return %c0_i32, %arg2 : i32, i32
  }
  func.func @transform_3(%arg0: i32, %arg1: i32, %arg2: i32) -> (i32, i32, i32, i32) {
    %c0_i32 = arith.constant 0 : i32
    %c0_i32_0 = arith.constant 0 : i32
    return %arg0, %arg1, %c0_i32, %arg2 : i32, i32, i32, i32
  }
}

</mosaic_0001>

<bundles_post_ra>
// kernel: tpu_custom_call.1
= control target key start
LH: loop header
LB: loop body
LE: loop exit
PB: predicated region body
PF: predicated region fallthrough
CT: control target
= control target key end

     0   :  { %8 = vsyncpa [#allocation3], 0  ;;  %s4819_s0 = inlined_call_operand.vmem [shape: bf16[2,18,18,4], index: 0, kind: input, shape index: {}]   ;;  %s4820_s1 = inlined_call_operand.vmem [shape: bf16[3,3,4,128], index: 1, kind: input, shape index: {}]   ;;  %s4821_s2 = inlined_call_operand.vmem [shape: f32[1,128], index: 2, kind: input, shape index: {}]   ;;  %s4822_s3 = inlined_call_operand.hbm [shape: f32[2,16,16,128], index: 3, kind: output, shape index: {}]  }
   0x1   :  { %10 = vsyncpa [#allocation3 + $0x1], 0  ;;  %s3779_s12 = smov 0   ;;  %s3781_s13 = smov 0  }
   0x2   :  { %s3783_s14 = smov 0   ;;  %s3785_s15 = smov 0  }
   0x3   :  { %s3787_s16 = smov 0   ;;  %s3789_s17 = smov 0  }
   0x4   :  { %s3791_s18 = smov 0   ;;  %s3793_s19 = smov 0  }
   0x5 LB: > { %s2880_s20 = sadd.s32 4294967295, %s3754_s19   ;;  %s2881_s21 = sadd.s32 4294967294, %s3754_s19   ;;  %s3754_s19 = sphi %s3793_s19, %s16_s19   ;;  %s3750_s18 = sphi %s3791_s18, %s4853_s18   ;;  %s3746_s17 = sphi %s3789_s17, %s4852_s17   ;;  %s3742_s16 = sphi %s3787_s16, %s4851_s16   ;;  %s3738_s15 = sphi %s3785_s15, %s4850_s15   ;;  %s3734_s14 = sphi %s3783_s14, %s4849_s14   ;;  %s3730_s13 = sphi %s3781_s13, %s4848_s13   ;;  %s3726_s12 = sphi %s3779_s12, %s4847_s12  }
   0x6   : > { %s31_s22 = sadd.s32 1, %s3746_s17  ;;  %s35_s23 = sadd.s32 1, %s3750_s18 }
   0x7   : > { %p33_p0 = scmp.ge.s32.totalorder %s31_s22, 2  ;;  %p134_p1 = scmp.ne.s32.totalorder %s3734_s14, %s3730_s13 }
   0x8   : > { %p135_p2 = scmp.eq.s32.totalorder %s2880_s20, 3  ;;  %p140_p5 = scmp.ne.s32.totalorder %s3730_s13, %s3726_s12 }
   0x9   : > { %s4855_s22 = smov (%p33_p0, %s31_s22), 0  ;;  %s4857_s23 = smov (!%p33_p0, %s35_s23), %s3750_s18 }
   0xa   : > { %s118_s24 = ssub.s32 %s3746_s17, %s4855_s22  ;;  %p3830_p3 = por %p135_p2, %p134_p1 }
   0xb   : > { %p37_p4 = scmp.ge.s32.totalorder %s4857_s23, 2  ;;  %p141_p6 = scmp.eq.s32.totalorder %s2881_s21, 3 }
   0xc   : > { %p2886_p7 = scmp.ge.s32.totalorder %s3754_s19, 1  ;;  %p180_p9 = scmp.lt.s32.totalorder %s3754_s19, 5 }
   0xd   : > { %s4859_s23 = smov (%p37_p4, %s4857_s23), 0  ;;  %p3839_p8 = por %p141_p6, %p140_p5 }
   0xe   : > { %s117_s27 = ssub.s32 %s3750_s18, %s4859_s23  ;;  %s124_s28 = sadd.s32 1, %s3734_s14 }
   0xf   : > { %s119_s29 = sor.u32 %s118_s24, %s117_s27  ;;  %p181_p10 = pnand %p2886_p7, %p180_p9 }
  0x10   : > { %p122_p11 = scmp.eq.s32.totalorder %s119_s29, 0 }
  0x11   : > { %184 = sbr.rel (%p181_p10) target bundleno = 444 (0x1bc), region = 32 }
  0x12   : > { %s3848_s30 = scalar_select %p122_p11, %s3734_s14, %s124_s28  }
  0x18   : > { %v2892_v0 = vld [vmem:[%s4820_s1 + $0x2] sm:$0x3]  ;;  %vm500_vm0 = vcmask 1041408   ;;  %v3009_v1 = vld [vmem:[%s4820_s1 + $0x8] sm:$0x3]  ;;  %p211_p12 = scmp.lt.s32.totalorder %s3742_s16, 1 }
  0x19   : > { %3551 = vmatprep.subr.msk.bf16.mxu1 %vm500_vm0, %v2892_v0  ;;  %3555 = vmatprep.subr.msk.bf16.mxu0 %vm500_vm0, %v3009_v1  ;;  %v502_v2 = vsel %vm500_vm0, %v2892_v0, 0  ;;  %v3861_v3 = vsel %vm500_vm0, %v3009_v1, 0  ;;  %v245_v4 = vld [vmem:[%s4820_s1] sm:$0x3]  ;;  %s3176_s11 = smul.u32 96, %s3738_s15  ;;  %vm475_vm3 = vcmask 31744  }
  0x1a   : > { %3260 = vmatpush3.bf16.msra.mxu1 %v502_v2  ;;  %3332 = vmatpush3.bf16.msra.mxu0 %v3861_v3  ;;  %s212_s8 = scalar_select %p211_p12, %s3742_s16, 1  ;;  %v3042_v5 = vld [vmem:[%s4820_s1 + $0xa] sm:$0x3]  ;;  %vm254_vm1 = vsmask.f32 3328  ;;  %v3901_v17 = vsel %vm500_vm0, %v245_v4, 0 }
  0x1b   : > { %3552 = vmatprep.subr.msk.bf16.mxu1 %vm500_vm0, %v245_v4  ;;  %3557 = vmatprep.subr.msk.bf16.mxu0 %vm500_vm0, %v3042_v5  ;;  %vm255_vm2 = vsmask.f32 7440  ;;  %v3907_v26 = vld [vmem:[%s4820_s1 + $0xc] sm:$0x3]  ;;  %v3924_v37 = vsel %vm500_vm0, %v3042_v5, 0  ;;  %vm789_vm5 = vcmask 1042432  }
  0x1c   : > { %s3561_s24 = smul.u32 216, %s212_s8  ;;  %vm3916_vm4 = vmor %vm254_vm1, %vm255_vm2  ;;  %v3928_v41 = vsel %vm500_vm0, %v3907_v26, 0  ;;  %vm790_vm6 = vcmask 1046532   ;;  %v4717_v32 = vld [vmem:[%s4821_s2] ss:$0 sm:$0xff]  ;;  %s3177_s8 = sshll.u32 %s3738_s15, 4 }
  0x1d   : > { %vm4071_vm7 = vmor %vm789_vm5, %vm790_vm6  ;;  %s3172_s9 = sshll.u32 %s3742_s16, 5  ;;  %s3756_s28 = smov [#allocation2]  }
  0x1e   : > { %s215_s29 = scalar_lea.vmem %s4819_s0, %s3561_s24  ;;  %s2760_s10 = sadd.s32 %s3177_s8, %s3172_s9 }
  0x1f   : > { %s3877_s4 = scalar_lea.vmem %s215_s29, %s3176_s11  ;;  %s208_s29 = sand.u32 1, %s3730_s13  }
  0x20   : > { %v3880_v6 = vld [vmem:[%s3877_s4] sm:$0xf]  ;;  %v3883_v7 = vld [vmem:[%s3877_s4 + $0x4] sm:$0xf]  ;;  %v3886_v8 = vld [vmem:[%s3877_s4 + $0x8] sm:$0x1] }
  0x21   : > { %v258_v9 = vshrl.u32 %v3880_v6, 16  ;;  %v261_v10 = vshll.u32 %v3880_v6, 16  ;;  %v267_v11 = vshll.u32 %v3883_v7, 16  ;;  %v271_v12 = vshrl.u32 %v3883_v7, 16  ;;  %v2985_v13 = vld [vmem:[%s3877_s4 + $0xc] sm:$0xf] }
  0x22   : > { %v277_v14 = vshll.u32 %v3886_v8, 16  ;;  %v3895_v15 = vld [vmem:[%s3877_s4 + $0x10] sm:$0xf]  ;;  %v3898_v16 = vld [vmem:[%s3877_s4 + $0x14] sm:$0x1]  ;;  %v1241_v23 = vshrl.u32 %v2985_v13, 16 }
  0x23   : > { %v260_v18 = vrot.slane %v258_v9, 4  ;;  %v263_v19 = vrot.slane %v261_v10, 5  ;;  %v269_v20 = vrot.slane %v267_v11, 5  ;;  %v273_v21 = vrot.slane %v271_v12, 4  ;;  %v3912_v31 = vld [vmem:[%s3877_s4 + $0xc] sm:$0xf] }
  0x24   : > { %v279_v22 = vrot.slane %v277_v14, 5  ;;  %v1244_v24 = vshll.u32 %v2985_v13, 16  ;;  %v1250_v25 = vshll.u32 %v3895_v15, 16  ;;  %v1254_v29 = vshrl.u32 %v3895_v15, 16  ;;  %v3921_v36 = vld [vmem:[%s3877_s4 + $0x10] sm:$0xf] }
  0x25   : > { %v264_v27 = vor.u32 %v263_v19, %v260_v18  ;;  %v274_v28 = vor.u32 %v273_v21, %v269_v20  ;;  %v1260_v30 = vshll.u32 %v3898_v16, 16  ;;  %v1243_v33 = vrot.slane %v1241_v23, 4  ;;  %v3931_v44 = vld [vmem:[%s3877_s4 + $0x14] sm:$0x1]  ;;  %v2988_v55 = vld [vmem:[%s3877_s4 + $0x18] sm:$0xf] }
  0x26   : > { %v1246_v34 = vrot.slane %v1244_v24, 5  ;;  %v1252_v35 = vrot.slane %v1250_v25, 5  ;;  %v1256_v40 = vrot.slane %v1254_v29, 4  ;;  %v282_v45 = vshrl.u32 %v3912_v31, 16  ;;  %v3944_v60 = vld [vmem:[%s3877_s4 + $0x1c] sm:$0xf] }
  0x27   : > { %v265_v38 = vrot.slane %v264_v27, 4  ;;  %v275_v39 = vrot.slane %v274_v28, 4  ;;  %v1262_v43 = vrot.slane %v1260_v30, 5  ;;  %v285_v46 = vshll.u32 %v3912_v31, 16  ;;  %v3952_v1 = vld [vmem:[%s3877_s4 + $0x20] sm:$0x1] }
  0x28   : > { %v1247_v42 = vor.u32 %v1246_v34, %v1243_v33  ;;  %v1257_v49 = vor.u32 %v1256_v40, %v1252_v35  ;;  %v291_v50 = vshll.u32 %v3921_v36, 16  ;;  %v284_v53 = vrot.slane %v282_v45, 4  ;;  %v3960_v21 = vld [vmem:[%s3877_s4 + $0x18] sm:$0xf]  ;;  %v3967_v27 = vld [vmem:[%s3877_s4 + $0x1c] sm:$0xf] }
  0x29   : > { %v270_v47 = vsel %vm3916_vm4, %v265_v38, %v269_v20  ;;  %v280_v48 = vsel %vm3916_vm4, %v275_v39, %v279_v22  ;;  %v287_v54 = vrot.slane %v285_v46, 5  ;;  %v295_v58 = vshrl.u32 %v3921_v36, 16  ;;  %v3975_v38 = vld [vmem:[%s3877_s4 + $0x20] sm:$0x1]  ;;  %s2887_s6 = sshll.u32 %s208_s29, 7  ;;  %s3173_s15 = sshll.u32 %s2760_s10, 7 }
  0x2a   : > { %v2893_v51 = vcombine.low %v270_v47, %v280_v48  ;;  %v1248_v52 = vrot.slane %v1247_v42, 4  ;;  %v1258_v56 = vrot.slane %v1257_v49, 4  ;;  %v293_v57 = vrot.slane %v291_v50, 5  ;;  %v2991_v47 = vld [vmem:[%s3877_s4 + $0x24] sm:$0xf]  ;;  %s4725_s7 = scalar_lea.vmem [#allocation2], %s2887_s6  ;;  %s4758_s21 = scalar_lea.hbm %s4822_s3, %s3173_s15 }
  0x2b   : > { %v301_v59 = vshll.u32 %v3931_v44, 16  ;;  %v1632_v62 = vrot.slane %v3895_v15, 5  ;;  %v1635_v63 = vrot.slane %v3898_v16, 5  ;;  %v288_v0 = vor.u32 %v287_v54, %v284_v53  ;;  %s2763_s16 = sshll.u32 %s4725_s7, 4  ;;  %s4767_s24 = scalar_lea.sflag [#allocation3], %s208_s29  ;;  %s4760_s16 = int_to_ptr.vmem [resolvable:$true] %s2763_s16 }
  0x2c   : > { %3261 = vmatprep.mubr.msk.bf16.mxu1 %vm475_vm3, %v2893_v51  ;;  %v1253_v61 = vsel %vm3916_vm4, %v1248_v52, %v1252_v35  ;;  %v1263_v2 = vsel %vm3916_vm4, %v1258_v56, %v1262_v43  ;;  %v297_v4 = vrot.slane %v295_v58, 4  ;;  %v1265_v9 = vshrl.u32 %v2988_v55, 16  ;;  %v3985_v52 = vld [vmem:[%s3877_s4 + $0x28] sm:$0xf]  ;;  %s3660_s27 = scalar_lea.vmem %s4760_s16, 2048 }
  0x2d   : > { %v303_v5 = vrot.slane %v301_v59, 5  ;;  %v3010_v10 = vcombine.low %v1253_v61, %v1263_v2  ;;  %v289_v11 = vrot.slane %v288_v0, 4  ;;  %v1268_v12 = vshll.u32 %v2988_v55, 16  ;;  %v3997_v61 = vld [vmem:[%s3877_s4 + $0x2c] sm:$0x1]  ;;  %p3661_p13 = scmp.ne.s32.totalorder %s4760_s16, %s3660_s27 }
  0x2e   : > { %v1274_v13 = vshll.u32 %v3944_v60, 16  ;;  %v298_v14 = vor.u32 %v297_v4, %v293_v57  ;;  %v1267_v18 = vrot.slane %v1265_v9, 4  ;;  %v1278_v19 = vshrl.u32 %v3944_v60, 16 }
  0x2f   : > { %v1284_v20 = vshll.u32 %v3952_v1, 16  ;;  %3333 = vmatprep.mubr.msk.bf16.mxu0 %vm475_vm3, %v3010_v10  ;;  %v294_v22 = vsel %vm3916_vm4, %v289_v11, %v293_v57  ;;  %v1270_v23 = vrot.slane %v1268_v12, 5  ;;  %v1639_v25 = vrot.slane %v3944_v60, 5  ;;  %v3991_v57 = vld [vmem:[%s4820_s1 + $0x4] sm:$0x3]  ;;  %p3662_p0 = pnand %p3661_p13, %p3830_p3 }
  0x30   : > { %v1276_v24 = vrot.slane %v1274_v13, 5  ;;  %v299_v28 = vrot.slane %v298_v14, 4  ;;  %v1280_v29 = vrot.slane %v1278_v19, 4  ;;  %v1642_v33 = vrot.slane %v3952_v1, 5  ;;  %v4004_v11 = vld [vmem:[%s3877_s4 + $0x24] sm:$0xf] }
  0x31   : > { %v1286_v30 = vrot.slane %v1284_v20, 5  ;;  %v1271_v34 = vor.u32 %v1270_v23, %v1267_v18  ;;  %v3972_v35 = vrot.slane %v1639_v25, 4  ;;  %v306_v39 = vshrl.u32 %v3960_v21, 16  ;;  %v4007_v19 = vld [vmem:[%s3877_s4 + $0x28] sm:$0xf]  ;;  %p3663_p1 = pneg %p3662_p0 }
  0x32   : > { %v309_v40 = vshll.u32 %v3960_v21, 16  ;;  %v304_v42 = vsel %vm3916_vm4, %v299_v28, %v303_v5  ;;  %v1281_v43 = vor.u32 %v1280_v29, %v1276_v24  ;;  %v315_v45 = vshll.u32 %v3967_v27, 16  ;;  %v4017_v29 = vld [vmem:[%s3877_s4 + $0x2c] sm:$0x1] }
  0x33   : > { %v319_v46 = vshrl.u32 %v3967_v27, 16  ;;  %v2894_v48 = vcombine.low %v294_v22, %v304_v42  ;;  %v1272_v49 = vrot.slane %v1271_v34, 4  ;;  %v308_v50 = vrot.slane %v306_v39, 4 }
  0x34   : > { %v311_v51 = vrot.slane %v309_v40, 5  ;;  %v1282_v53 = vrot.slane %v1281_v43, 4  ;;  %v317_v54 = vrot.slane %v315_v45, 5  ;;  %v325_v56 = vshll.u32 %v3975_v38, 16  ;;  %v2994_v45 = vld [vmem:[%s3877_s4 + $0x30] sm:$0xf] }
  0x35   : > { %v321_v55 = vrot.slane %v319_v46, 4  ;;  %3262 = vmatmul.mubr.msk.bf16.vlgmr.msra.gmra.mrb[0].mxu1 %vm475_vm3, %v2894_v48  ;;  %v1277_v58 = vsel %vm3916_vm4, %v1272_v49, %v1276_v24  ;;  %v1289_v0 = vshrl.u32 %v2991_v47, 16  ;;  %v1292_v2 = vshll.u32 %v2991_v47, 16 }
  0x36   : > { %v312_v59 = vor.u32 %v311_v51, %v308_v50  ;;  %3278 = vmatpush3.bf16.msra.mxu1 %v3901_v17  ;;  %v1287_v4 = vsel %vm3916_vm4, %v1282_v53, %v1286_v30  ;;  %v327_v9 = vrot.slane %v325_v56, 5  ;;  %v1298_v10 = vshll.u32 %v3985_v52, 16  ;;  %v4027_v50 = vld [vmem:[%s3877_s4 + $0x34] sm:$0xf] }
  0x37   : > { %v322_v5 = vor.u32 %v321_v55, %v317_v54  ;;  %v3011_v12 = vcombine.low %v1277_v58, %v1287_v4  ;;  %v1291_v14 = vrot.slane %v1289_v0, 4  ;;  %v1294_v18 = vrot.slane %v1292_v2, 5  ;;  %3553 = vmatprep.subr.msk.bf16.mxu1 %vm500_vm0, %v3991_v57  ;;  %v4037_v58 = vld [vmem:[%s3877_s4 + $0x38] sm:$0x1] }
  0x38   : > { %v313_v13 = vrot.slane %v312_v59, 4  ;;  %v1300_v20 = vrot.slane %v1298_v10, 5  ;;  %v1302_v22 = vshrl.u32 %v3985_v52, 16  ;;  %v1308_v23 = vshll.u32 %v3997_v61, 16 }
  0x39   : > { %v323_v17 = vrot.slane %v322_v5, 4  ;;  %3334 = vmatmul.mubr.msk.bf16.vlgmr.msra.gmra.mrb[0].mxu0 %vm475_vm3, %v3011_v12  ;;  %v1295_v28 = vor.u32 %v1294_v18, %v1291_v14  ;;  %v330_v30 = vshrl.u32 %v4004_v11, 16  ;;  %v333_v34 = vshll.u32 %v4004_v11, 16  ;;  %v4042_v14 = vld [vmem:[%s3877_s4 + $0x30] sm:$0xf] }
  0x3a   : > { %v318_v24 = vsel %vm3916_vm4, %v313_v13, %v317_v54  ;;  %3350 = vmatpush3.bf16.msra.mxu0 %v3924_v37  ;;  %v1304_v40 = vrot.slane %v1302_v22, 4  ;;  %v1310_v42 = vrot.slane %v1308_v23, 5  ;;  %v339_v43 = vshll.u32 %v4007_v19, 16  ;;  %v4048_v23 = vld [vmem:[%s3877_s4 + $0x34] sm:$0xf] }
  0x3b   : > { %v328_v39 = vsel %vm3916_vm4, %v323_v17, %v327_v9  ;;  %v1296_v47 = vrot.slane %v1295_v28, 4  ;;  %v332_v48 = vrot.slane %v330_v30, 4  ;;  %v335_v49 = vrot.slane %v333_v34, 5  ;;  %3558 = vmatprep.subr.msk.bf16.mxu0 %vm500_vm0, %v3907_v26 }
  0x3c   : > { %v2895_v46 = vcombine.low %v318_v24, %v328_v39  ;;  %v1305_v37 = vor.u32 %v1304_v40, %v1300_v20  ;;  %v341_v51 = vrot.slane %v339_v43, 5  ;;  %v343_v53 = vshrl.u32 %v4007_v19, 16  ;;  %v4053_v39 = vld [vmem:[%s3877_s4 + $0x38] sm:$0x1] }
  0x3d   : > { %v349_v54 = vshll.u32 %v4017_v29, 16  ;;  %v1301_v55 = vsel %vm3916_vm4, %v1296_v47, %v1300_v20  ;;  %v336_v56 = vor.u32 %v335_v49, %v332_v48  ;;  %v1313_v59 = vshrl.u32 %v2994_v45, 16 }
  0x3e   : > { %3265 = vmatprep.mubr.msk.bf16.mxu1 %vm475_vm3, %v2895_v46  ;;  %v1316_v0 = vshll.u32 %v2994_v45, 16  ;;  %v1306_v2 = vrot.slane %v1305_v37, 4  ;;  %v345_v26 = vrot.slane %v343_v53, 4  ;;  %v1322_v5 = vshll.u32 %v4027_v50, 16  ;;  %v3026_v37 = vld [vmem:[%s3877_s4 + $0xc] sm:$0xe] }
  0x3f   : > { %v351_v4 = vrot.slane %v349_v54, 5  ;;  %v337_v9 = vrot.slane %v336_v56, 4  ;;  %v1315_v10 = vrot.slane %v1313_v59, 4  ;;  %v1326_v13 = vshrl.u32 %v4027_v50, 16  ;;  %v4065_v56 = vld [vmem:[%s3877_s4 + $0x3c] sm:$0xf] }
  0x40   : > { %v1318_v12 = vrot.slane %v1316_v0, 5  ;;  %v1311_v18 = vsel %vm3916_vm4, %v1306_v2, %v1310_v42  ;;  %v346_v17 = vor.u32 %v345_v26, %v341_v51  ;;  %v1324_v20 = vrot.slane %v1322_v5, 5 }
  0x41   : > { %v1332_v22 = vshll.u32 %v4037_v58, 16  ;;  %v3012_v24 = vcombine.low %v1301_v55, %v1311_v18  ;;  %v342_v28 = vsel %vm3916_vm4, %v337_v9, %v341_v51  ;;  %v1328_v34 = vrot.slane %v1326_v13, 4  ;;  %v4079_v18 = vld [vmem:[%s3877_s4 + $0x44] sm:$0x1] }
  0x42   : > { %v1319_v30 = vor.u32 %v1318_v12, %v1315_v10  ;;  %v347_v40 = vrot.slane %v346_v17, 4  ;;  %v354_v42 = vshrl.u32 %v4042_v14, 16  ;;  %v357_v45 = vshll.u32 %v4042_v14, 16  ;;  %v3027_v17 = vld [vmem:[%s3877_s4 + $0x18] sm:$0xe] }
  0x43   : > { %v1334_v43 = vrot.slane %v1332_v22, 5  ;;  %3337 = vmatprep.mubr.msk.bf16.mxu0 %vm475_vm3, %v3012_v24  ;;  %v1329_v47 = vor.u32 %v1328_v34, %v1324_v20  ;;  %v363_v48 = vshll.u32 %v4048_v23, 16  ;;  %v367_v49 = vshrl.u32 %v4048_v23, 16 }
  0x44   : > { %v1320_v46 = vrot.slane %v1319_v30, 4  ;;  %v352_v51 = vsel %vm3916_vm4, %v347_v40, %v351_v4  ;;  %v356_v53 = vrot.slane %v354_v42, 4  ;;  %v359_v54 = vrot.slane %v357_v45, 5  ;;  %v4076_v4 = vld [vmem:[%s3877_s4 + $0x40] sm:$0xf] }
  0x45   : > { %v373_v55 = vshll.u32 %v4053_v39, 16  ;;  %v2896_v59 = vcombine.low %v342_v28, %v352_v51  ;;  %v1330_v2 = vrot.slane %v1329_v47, 4  ;;  %v365_v26 = vrot.slane %v363_v48, 5  ;;  %v4090_v30 = vld [vmem:[%s3877_s4 + $0x48] sm:$0xf] }
  0x46   : > { %v1325_v0 = vsel %vm3916_vm4, %v1320_v46, %v1324_v20  ;;  %v360_v9 = vor.u32 %v359_v54, %v356_v53  ;;  %v369_v10 = vrot.slane %v367_v49, 4  ;;  %v3034_v13 = vrot.slane %v3026_v37, 9 }
  0x47   : > { %v375_v12 = vrot.slane %v373_v55, 5  ;;  %3266 = vmatmul.mubr.msk.bf16.gmra.mrb[4].mxu1 %vm475_vm3, %v2896_v59  ;;  %v1335_v20 = vsel %vm3916_vm4, %v1330_v2, %v1334_v43  ;;  %v1634_v22 = vrot.slane %v1632_v62, 4  ;;  %v378_v24 = vshrl.u32 %v4065_v56, 16  ;;  %v4110_v55 = vld [vmem:[%s3877_s4 + $0x50] sm:$0x1] }
  0x48   : > { %v381_v28 = vshll.u32 %v4065_v56, 16  ;;  %v3013_v34 = vcombine.low %v1325_v0, %v1335_v20  ;;  %v361_v40 = vrot.slane %v360_v9, 4  ;;  %v370_v42 = vor.u32 %v369_v10, %v365_v26 }
  0x49   : > { %v1633_v45 = vsel %vm4071_vm7, %v3034_v13, %v1632_v62  ;;  %v1636_v43 = vsel %vm4071_vm7, %v1634_v22, %v1635_v63  ;;  %v380_v46 = vrot.slane %v378_v24, 4  ;;  %v387_v48 = vshll.u32 %v4076_v4, 16  ;;  %v4106_v62 = vld [vmem:[%s3877_s4 + $0x4c] sm:$0xf] }
  0x4a   : > { %v383_v47 = vrot.slane %v381_v28, 5  ;;  %3338 = vmatmul.mubr.msk.bf16.gmra.mrb[4].mxu0 %vm475_vm3, %v3013_v34  ;;  %v366_v49 = vsel %vm3916_vm4, %v361_v40, %v365_v26  ;;  %v371_v37 = vrot.slane %v370_v42, 4  ;;  %v3043_v15 = vcombine.low %v1633_v45, %v1636_v43  ;;  %v4128_v28 = vld [vmem:[%s3877_s4 + $0x54] sm:$0xf]  ;;  %v4139_v34 = vld [vmem:[%s4820_s1 + $0xe] sm:$0x3] }
  0x4b   : > { %v391_v51 = vshrl.u32 %v4076_v4, 16  ;;  %v389_v53 = vrot.slane %v387_v48, 5  ;;  %v397_v63 = vshll.u32 %v4079_v18, 16  ;;  %v3035_v54 = vrot.slane %v3027_v17, 9 }
  0x4c   : > { %v384_v16 = vor.u32 %v383_v47, %v380_v46  ;;  %v376_v59 = vsel %vm3916_vm4, %v371_v37, %v375_v12  ;;  %3351 = vmatprep.mubr.msk.bf16.mxu0 %vm475_vm3, %v3043_v15  ;;  %v1643_v2 = vsel %vm4071_vm7, %v3972_v35, %v1642_v33  ;;  %v402_v26 = vshrl.u32 %v4090_v30, 16  ;;  %v3028_v12 = vld [vmem:[%s3877_s4 + $0x24] sm:$0xe]  ;;  %v4144_v37 = vld [vmem:[%s3877_s4 + $0x58] sm:$0xf] }
  0x4d   : > { %v393_v0 = vrot.slane %v391_v51, 4  ;;  %v2897_v9 = vcombine.low %v366_v49, %v376_v59  ;;  %v399_v13 = vrot.slane %v397_v63, 5  ;;  %v1640_v17 = vsel %vm4071_vm7, %v3035_v54, %v1639_v25  ;;  %v4153_v54 = vld [vmem:[%s3877_s4 + $0x5c] sm:$0x1] }
  0x4e   : > { %v385_v10 = vrot.slane %v384_v16, 4  ;;  %v3044_v22 = vcombine.low %v1640_v17, %v1643_v2  ;;  %v404_v24 = vrot.slane %v402_v26, 4  ;;  %v405_v1 = vshll.u32 %v4090_v30, 16 }
  0x4f   : > { %v394_v20 = vor.u32 %v393_v0, %v389_v53  ;;  %3269 = vmatprep.mubr.msk.bf16.mxu1 %vm475_vm3, %v2897_v9  ;;  %v411_v35 = vshll.u32 %v4106_v62, 16  ;;  %v415_v60 = vshrl.u32 %v4106_v62, 16  ;;  %v421_v25 = vshll.u32 %v4110_v55, 16 }
  0x50   : > { %v390_v33 = vsel %vm3916_vm4, %v385_v10, %v389_v53  ;;  %v407_v42 = vrot.slane %v405_v1, 5  ;;  %v3036_v45 = vrot.slane %v3028_v12, 9  ;;  %v1646_v43 = vrot.slane %v3985_v52, 5  ;;  %v3029_v10 = vld [vmem:[%s3877_s4 + $0x30] sm:$0xe] }
  0x51   : > { %v395_v40 = vrot.slane %v394_v20, 4  ;;  %v413_v46 = vrot.slane %v411_v35, 5  ;;  %v417_v47 = vrot.slane %v415_v60, 4  ;;  %v423_v48 = vrot.slane %v421_v25, 5 }
  0x52   : > { %v1649_v49 = vrot.slane %v3997_v61, 5  ;;  %3352 = vmatmul.mubr.msk.bf16.vlgmr.msra.gmra.mrb[0].mxu0 %vm475_vm3, %v3044_v22  ;;  %v408_v51 = vor.u32 %v407_v42, %v404_v24  ;;  %v1647_v16 = vsel %vm4071_vm7, %v3036_v45, %v1646_v43  ;;  %v1648_v53 = vrot.slane %v1646_v43, 4  ;;  %v4174_v42 = vld [vmem:[%s3877_s4 + $0x40] sm:$0xf]  ;;  %v4177_v45 = vld [vmem:[%s3877_s4 + $0x44] sm:$0x1] }
  0x53   : > { %v400_v15 = vsel %vm3916_vm4, %v395_v40, %v399_v13  ;;  %3368 = vmatpush3.bf16.msra.mxu0 %v3928_v41  ;;  %v418_v52 = vor.u32 %v417_v47, %v413_v46  ;;  %v426_v61 = vshrl.u32 %v4128_v28, 16  ;;  %v429_v59 = vshll.u32 %v4128_v28, 16 }
  0x54   : > { %v2898_v63 = vcombine.low %v390_v33, %v400_v15  ;;  %v409_v0 = vrot.slane %v408_v51, 4  ;;  %v1650_v2 = vsel %vm4071_vm7, %v1648_v53, %v1649_v49  ;;  %v435_v26 = vshll.u32 %v4144_v37, 16  ;;  %3559 = vmatprep.subr.msk.bf16.mxu0 %vm500_vm0, %v4139_v34  ;;  %v3030_v33 = vld [vmem:[%s3877_s4 + $0x3c] sm:$0xe] }
  0x55   : > { %v439_v9 = vshrl.u32 %v4144_v37, 16  ;;  %v419_v41 = vrot.slane %v418_v52, 4  ;;  %v3045_v13 = vcombine.low %v1647_v16, %v1650_v2  ;;  %v428_v17 = vrot.slane %v426_v61, 4  ;;  %v3031_v2 = vld [vmem:[%s3877_s4 + $0x48] sm:$0xe] }
  0x56   : > { %3270 = vmatmul.mubr.msk.bf16.gmra.mrb[8].mxu1 %vm475_vm3, %v2898_v63  ;;  %v431_v12 = vrot.slane %v429_v59, 5  ;;  %v414_v20 = vsel %vm3916_vm4, %v409_v0, %v413_v46  ;;  %v437_v22 = vrot.slane %v435_v26, 5  ;;  %v445_v1 = vshll.u32 %v4153_v54, 16  ;;  %v4192_v59 = vld [vmem:[%s3877_s4 + $0x4c] sm:$0xf] }
  0x57   : > { %v441_v24 = vrot.slane %v439_v9, 4  ;;  %v424_v35 = vsel %vm3916_vm4, %v419_v41, %v423_v48  ;;  %3355 = vmatprep.mubr.msk.bf16.mxu0 %vm475_vm3, %v3045_v13  ;;  %v3037_v25 = vrot.slane %v3029_v10, 9  ;;  %v1653_v40 = vrot.slane %v4027_v50, 5  ;;  %v4195_v0 = vld [vmem:[%s3877_s4 + $0x50] sm:$0x1] }
  0x58   : > { %v432_v60 = vor.u32 %v431_v12, %v428_v17  ;;  %v2899_v43 = vcombine.low %v414_v20, %v424_v35  ;;  %v447_v47 = vrot.slane %v445_v1, 5  ;;  %v1656_v49 = vrot.slane %v4037_v58, 5  ;;  %v4203_v17 = vld [vmem:[%s3877_s4 + $0x58] sm:$0xf]  ;;  %v4206_v12 = vld [vmem:[%s3877_s4 + $0x5c] sm:$0x1] }
  0x59   : > { %v442_v46 = vor.u32 %v441_v24, %v437_v22  ;;  %v1654_v48 = vsel %vm4071_vm7, %v3037_v25, %v1653_v40  ;;  %v1655_v51 = vrot.slane %v1653_v40, 4  ;;  %v3038_v16 = vrot.slane %v3030_v33, 9  ;;  %4834 = vst [vmem:[#allocation5_spill] sm:$0xff] %v4206_v12  ;;  %v4216_v35 = vld [vmem:[%s3877_s4 + $0x64] sm:$0xf] }
  0x5a   : > { %v433_v15 = vrot.slane %v432_v60, 4  ;;  %3273 = vmatprep.mubr.msk.bf16.mxu1 %vm475_vm3, %v2899_v43  ;;  %v1660_v53 = vrot.slane %v4174_v42, 5  ;;  %v1663_v63 = vrot.slane %v4177_v45, 5  ;;  %v2909_v61 = vcombine.low %v3880_v6, %v3883_v7  ;;  %v3032_v6 = vld [vmem:[%s3877_s4 + $0x54] sm:$0xe]  ;;  %4835 = vst [vmem:[#allocation6_spill] sm:$0xff] %v4216_v35 }
  0x5b   : > { %v443_v50 = vrot.slane %v442_v46, 4  ;;  %v1657_v58 = vsel %vm4071_vm7, %v1655_v51, %v1656_v49  ;;  %v1667_v24 = vrot.slane %v4192_v59, 5  ;;  %v1670_v1 = vrot.slane %v4195_v0, 5  ;;  %v4219_v60 = vld [vmem:[%s3877_s4 + $0x68] sm:$0x1] }
  0x5c   : > { %v438_v52 = vsel %vm3916_vm4, %v433_v15, %v437_v22  ;;  %v3046_v9 = vcombine.low %v1654_v48, %v1657_v58  ;;  %v1661_v10 = vsel %vm4071_vm7, %v3038_v16, %v1660_v53  ;;  %v1662_v41 = vrot.slane %v1660_v53, 4  ;;  %4836 = vst [vmem:[#allocation7_spill] sm:$0xff] %v4219_v60 }
  0x5d   : > { %v448_v26 = vsel %vm3916_vm4, %v443_v50, %v447_v47  ;;  %v3039_v22 = vrot.slane %v3031_v2, 9  ;;  %v1669_v40 = vrot.slane %v1667_v24, 4  ;;  %v3040_v43 = vrot.slane %v3032_v6, 9  ;;  %v3033_v47 = vld [vmem:[%s3877_s4 + $0x60] sm:$0xe] }
  0x5e   : > { %v2900_v13 = vcombine.low %v438_v52, %v448_v26  ;;  %3356 = vmatmul.mubr.msk.bf16.gmra.mrb[4].mxu0 %vm475_vm3, %v3046_v9  ;;  %v1664_v20 = vsel %vm4071_vm7, %v1662_v41, %v1663_v63  ;;  %v1674_v46 = vrot.slane %v4203_v17, 5  ;;  %v801_v49 = vrot.slane %v3921_v36, 5  ;;  %v767_v2 = vld [vmem:[%s3877_s4 + $0x18] sm:$0xe]  ;;  %v4251_v6 = vld [vmem:[%s4820_s1 + $0x6] sm:$0x3] }
  0x5f   : > { %v3047_v33 = vcombine.low %v1661_v10, %v1664_v20  ;;  %v1668_v25 = vsel %vm4071_vm7, %v3039_v22, %v1667_v24  ;;  %v1677_v15 = vrot.slane %v4206_v12, 5  ;;  %v1671_v48 = vsel %vm4071_vm7, %v1669_v40, %v1670_v1  ;;  %v769_v1 = vld [vmem:[%s3877_s4 + $0x30] sm:$0xe] }
  0x60   : > { %3274 = vmatmul.mubr.msk.bf16.gmra.mrb[12].mxu1 %vm475_vm3, %v2900_v13  ;;  %v1675_v51 = vsel %vm4071_vm7, %v3040_v43, %v1674_v46  ;;  %v1676_v16 = vrot.slane %v1674_v46, 4  ;;  %v1681_v50 = vrot.slane %v4216_v35, 5  ;;  %v2910_v53 = vcombine.low %v3912_v31, %v3921_v36  ;;  %v768_v36 = vld [vmem:[%s3877_s4 + $0x24] sm:$0xe]  ;;  %v4525_v12 = vld [vmem:[%s3877_s4 + $0x70] sm:$0xf] }
  0x61   : > { %3279 = vmatprep.mubr.msk.bf16.mxu1 %vm475_vm3, %v2909_v61  ;;  %3359 = vmatprep.mubr.msk.bf16.mxu0 %vm475_vm3, %v3047_v33  ;;  %v3048_v63 = vcombine.low %v1668_v25, %v1671_v48  ;;  %v3041_v52 = vrot.slane %v3033_v47, 9  ;;  %v1684_v58 = vrot.slane %v4219_v60, 5  ;;  %v766_v61 = vld [vmem:[%s3877_s4 + $0xc] sm:$0xe]  ;;  %v804_v26 = vrot.slane %v3931_v44, 5 }
  0x62   : > { %v2911_v9 = vcombine.low %v3960_v21, %v3967_v27  ;;  %v1678_v10 = vsel %vm4071_vm7, %v1676_v16, %v1677_v15  ;;  %v1683_v41 = vrot.slane %v1681_v50, 4  ;;  %v899_v13 = vsel %vm500_vm0, %v3991_v57, 0  ;;  %v3640_v16 = vld [vmem:[%s3877_s4 + $0x18] sm:$0xff]   ;;  %v4497_v60 = vld [vmem:[%s3877_s4 + $0x64] sm:$0xf] }
  0x63   : > { %v3049_v31 = vcombine.low %v1675_v51, %v1678_v10  ;;  %v2926_v44 = vrot.slane %v766_v61, 9  ;;  %v803_v20 = vrot.slane %v801_v49, 4  ;;  %v2927_v21 = vrot.slane %v767_v2, 9  ;;  %4837 = vst [vmem:[#allocation8_spill] sm:$0xff] %v4497_v60 }
  0x64   : > { %v1682_v22 = vsel %vm4071_vm7, %v3041_v52, %v1681_v50  ;;  %v1685_v57 = vsel %vm4071_vm7, %v1683_v41, %v1684_v58  ;;  %v808_v24 = vrot.slane %v3967_v27, 5  ;;  %v811_v40 = vrot.slane %v3975_v38, 5 }
  0x65   : > { %v4264_v33 = vsel %vm4071_vm7, %v2926_v44, %v801_v49  ;;  %v4268_v25 = vsel %vm4071_vm7, %v803_v20, %v804_v26  ;;  %v2928_v43 = vrot.slane %v768_v36, 9  ;;  %v3050_v49 = vcombine.low %v1682_v22, %v1685_v57  ;;  %v3094_v26 = vld [vmem:[%s3877_s4 + $0x18] sm:$0xf]  ;;  %v3642_v57 = vld [vmem:[%s3877_s4 + $0x24] sm:$0xff]  }
  0x66   : > { %3360 = vmatmul.mubr.msk.bf16.gmra.mrb[8].mxu0 %vm475_vm3, %v3048_v63  ;;  %v2935_v27 = vcombine.low %v4264_v33, %v4268_v25  ;;  %v4277_v46 = vsel %vm4071_vm7, %v2927_v21, %v808_v24  ;;  %v810_v47 = vrot.slane %v808_v24, 4  ;;  %v815_v15 = vrot.slane %v4007_v19, 5 }
  0x67   : > { %3363 = vmatprep.mubr.msk.bf16.mxu0 %vm475_vm3, %v3049_v31  ;;  %v818_v48 = vrot.slane %v4017_v29, 5  ;;  %v2929_v38 = vrot.slane %v769_v1, 9  ;;  %v2912_v51 = vcombine.low %v4004_v11, %v4007_v19  ;;  %v825_v63 = vrot.slane %v4053_v39, 5  ;;  %v770_v19 = vld [vmem:[%s3877_s4 + $0x3c] sm:$0xe] }
  0x68   : > { %3280 = vmatmul.mubr.msk.bf16.vlgmr.msra.gmra.mrb[0].mxu1 %vm475_vm3, %v2910_v53  ;;  %v4286_v50 = vsel %vm4071_vm7, %v810_v47, %v811_v40  ;;  %v822_v53 = vrot.slane %v4048_v23, 5  ;;  %v2913_v52 = vcombine.low %v4042_v14, %v4048_v23  ;;  %v4296_v58 = vsel %vm4071_vm7, %v2928_v43, %v815_v15  ;;  %v765_v14 = vld [vmem:[%s3877_s4] sm:$0xe]  ;;  %v4324_v31 = vld [vmem:[%s3877_s4 + $0x1c] sm:$0xf] }
  0x69   : > { %3296 = vmatpush3.bf16.msra.mxu1 %v899_v13  ;;  %3283 = vmatprep.mubr.msk.bf16.mxu1 %vm475_vm3, %v2911_v9  ;;  %v2936_v29 = vcombine.low %v4277_v46, %v4286_v50  ;;  %v817_v11 = vrot.slane %v815_v15, 4  ;;  %v794_v61 = vrot.slane %v3883_v7, 5  ;;  %v2930_v10 = vrot.slane %v770_v19, 9  ;;  %v771_v1 = vld [vmem:[%s3877_s4 + $0x48] sm:$0xe] }
  0x6a   : > { %3554 = vmatprep.subr.msk.bf16.mxu1 %vm500_vm0, %v4251_v6  ;;  %v4302_v2 = vsel %vm4071_vm7, %v2929_v38, %v822_v53  ;;  %v824_v39 = vrot.slane %v822_v53, 4  ;;  %v797_v41 = vrot.slane %v3886_v8, 5  ;;  %v2925_v36 = vrot.slane %v765_v14, 9  ;;  %v4350_v38 = vld [vmem:[%s4820_s1 + $0x10] sm:$0x3] }
  0x6b   : > { %v4308_v23 = vsel %vm4071_vm7, %v817_v11, %v818_v48  ;;  %v796_v44 = vrot.slane %v794_v61, 4  ;;  %v829_v20 = vrot.slane %v4076_v4, 5  ;;  %v832_v21 = vrot.slane %v4079_v18, 5  ;;  %v4371_v14 = vld [vmem:[%s3877_s4 + $0x28] sm:$0xf] }
  0x6c   : > { %v4317_v9 = vsel %vm4071_vm7, %v824_v39, %v825_v63  ;;  %v2914_v22 = vcombine.low %v4065_v56, %v4076_v4  ;;  %v2079_v24 = vshrl.u32 %v3094_v26, 16  ;;  %v2082_v8 = vshll.u32 %v3094_v26, 16  ;;  %v3644_v4 = vld [vmem:[%s3877_s4 + $0x30] sm:$0xff]   ;;  %v4473_v46 = vld [vmem:[%s3877_s4 + $0x44] sm:$0x1] }
  0x6d   : > { %v2088_v40 = vshll.u32 %v4324_v31, 16  ;;  %v2092_v43 = vshrl.u32 %v4324_v31, 16  ;;  %v4336_v47 = vsel %vm4071_vm7, %v2930_v10, %v829_v20  ;;  %v2321_v18 = vsel %vm500_vm0, %v4139_v34, 0  ;;  %v3112_v7 = vld [vmem:[%s3877_s4 + $0x60] sm:$0xf] }
  0x6e   : > { %3364 = vmatmul.mubr.msk.bf16.gmra.mrb[12].mxu0 %vm475_vm3, %v3050_v49  ;;  %v831_v49 = vrot.slane %v829_v20, 4  ;;  %v2915_v56 = vcombine.low %v4090_v30, %v4106_v62  ;;  %v795_v15 = vsel %vm4071_vm7, %v2925_v36, %v794_v61  ;;  %v798_v48 = vsel %vm4071_vm7, %v796_v44, %v797_v41  ;;  %v4358_v30 = vld [vmem:[%s3877_s4 + $0x20] sm:$0x1]  ;;  %v3097_v61 = vld [vmem:[%s3877_s4 + $0x24] sm:$0xf] }
  0x6f   : > { %3369 = vmatprep.mubr.msk.bf16.mxu0 %vm475_vm3, %v3640_v16  ;;  %v2931_v34 = vrot.slane %v771_v1, 9  ;;  %v2081_v16 = vrot.slane %v2079_v24, 4  ;;  %v2084_v53 = vrot.slane %v2082_v8, 5  ;;  %v4364_v11 = vrot.slane %v2088_v40, 5  ;;  %v772_v44 = vld [vmem:[%s3877_s4 + $0x54] sm:$0xe] }
  0x70   : > { %3284 = vmatmul.mubr.msk.bf16.gmra.mrb[4].mxu1 %vm475_vm3, %v2912_v51  ;;  %v4354_v51 = vsel %vm4071_vm7, %v831_v49, %v832_v21  ;;  %v2094_v19 = vrot.slane %v2092_v43, 4  ;;  %v839_v39 = vrot.slane %v4110_v55, 5  ;;  %v2916_v10 = vcombine.low %v4128_v28, %v4144_v37  ;;  %v3100_v55 = vld [vmem:[%s3877_s4 + $0x30] sm:$0xf]  ;;  %v3646_v20 = vld [vmem:[%s3877_s4 + $0x3c] sm:$0xff]   ;;  %v3647_v1 = vld [vmem:[%s3877_s4 + $0x48] sm:$0xff]  }
  0x71   : > { %3287 = vmatprep.mubr.msk.bf16.mxu1 %vm475_vm3, %v2913_v52  ;;  %v836_v52 = vrot.slane %v4106_v62, 5  ;;  %v2934_v41 = vcombine.low %v795_v15, %v798_v48  ;;  %v2098_v36 = vshll.u32 %v4358_v30, 16  ;;  %v2085_v21 = vor.u32 %v2084_v53, %v2081_v16  ;;  %v4390_v8 = vld [vmem:[%s3877_s4 + $0x34] sm:$0xf] }
  0x72   : > { %v2095_v28 = vor.u32 %v2094_v19, %v4364_v11  ;;  %v2112_v40 = vshll.u32 %v4371_v14, 16  ;;  %v2116_v43 = vshrl.u32 %v4371_v14, 16  ;;  %v843_v15 = vrot.slane %v4144_v37, 5 }
  0x73   : > { %v4375_v62 = vsel %vm4071_vm7, %v2931_v34, %v836_v52  ;;  %v838_v26 = vrot.slane %v836_v52, 4  ;;  %v2136_v48 = vshll.u32 %v4390_v8, 16  ;;  %v2140_v34 = vshrl.u32 %v4390_v8, 16 }
  0x74   : > { %v846_v16 = vrot.slane %v4153_v54, 5  ;;  %v2086_v53 = vrot.slane %v2085_v21, 4  ;;  %v2100_v52 = vrot.slane %v2098_v36, 5  ;;  %v2096_v37 = vrot.slane %v2095_v28, 4  ;;  %v4413_v36 = vld [vmem:[%s3877_s4 + $0x2c] sm:$0x1] }
  0x75   : > { %v4387_v24 = vsel %vm4071_vm7, %v838_v26, %v839_v39  ;;  %v4409_v26 = vrot.slane %v2112_v40, 5  ;;  %v4420_v21 = vld [vmem:[%s3877_s4 + $0x38] sm:$0x1]  ;;  %v1101_v28 = vsel %vm500_vm0, %v4251_v6, 0 }
  0x76   : > { %3370 = vmatmul.mubr.msk.bf16.vlgmr.msra.gmra.mrb[0].mxu0 %vm475_vm3, %v3642_v57  ;;  %v2106_v57 = vshll.u32 %v3097_v61, 16  ;;  %v3648_v40 = vld [vmem:[%s3877_s4 + $0x54] sm:$0xff]  }
  0x77   : > { %3386 = vmatpush3.bf16.msra.mxu0 %v2321_v18  ;;  %3373 = vmatprep.mubr.msk.bf16.mxu0 %vm475_vm3, %v3644_v4  ;;  %v2127_v18 = vshrl.u32 %v3100_v55, 16  ;;  %v2932_v4 = vrot.slane %v772_v44, 9 }
  0x78   : > { %3288 = vmatmul.mubr.msk.bf16.gmra.mrb[8].mxu1 %vm475_vm3, %v2914_v22  ;;  %3560 = vmatprep.subr.msk.bf16.mxu0 %vm500_vm0, %v4350_v38  ;;  %v2103_v22 = vshrl.u32 %v3097_v61, 16  ;;  %v845_v61 = vrot.slane %v843_v15, 4  ;;  %v2108_v54 = vrot.slane %v2106_v57, 5  ;;  %v2142_v57 = vrot.slane %v2140_v34, 4  ;;  %v3106_v34 = vld [vmem:[%s3877_s4 + $0x48] sm:$0xf] }
  0x79   : > { %3291 = vmatprep.mubr.msk.bf16.mxu1 %vm475_vm3, %v2915_v56  ;;  %v2130_v56 = vshll.u32 %v3100_v55, 16  ;;  %v4405_v19 = vsel %vm4071_vm7, %v2932_v4, %v843_v15  ;;  %v2118_v55 = vrot.slane %v2116_v43, 4  ;;  %v2129_v44 = vrot.slane %v2127_v18, 4  ;;  %v4431_v43 = vld [vmem:[%s3877_s4 + $0x40] sm:$0xf] }
  0x7a   : > { %v2105_v39 = vrot.slane %v2103_v22, 4  ;;  %v4422_v22 = vrot.slane %v2136_v48, 5  ;;  %v3649_v18 = vld [vmem:[%s3877_s4 + $0x60] sm:$0xff]   ;;  %v2101_v4 = vsel %vm3916_vm4, %v2096_v37, %v2100_v52  ;;  %v2122_v48 = vshll.u32 %v4413_v36, 16 }
  0x7b   : > { %v2175_v52 = vshrl.u32 %v3106_v34, 16  ;;  %v2178_v37 = vshll.u32 %v3106_v34, 16 }
  0x7c   : > { %v2109_v15 = vor.u32 %v2108_v54, %v2105_v39  ;;  %v2143_v63 = vor.u32 %v2142_v57, %v4422_v22  ;;  %v3109_v57 = vld [vmem:[%s3877_s4 + $0x54] sm:$0xf] }
  0x7d   : > { %v2177_v50 = vrot.slane %v2175_v52, 4  ;;  %v2202_v34 = vshll.u32 %v3109_v57, 16 }
  0x7e   : > { %3374 = vmatmul.mubr.msk.bf16.gmra.mrb[4].mxu0 %vm475_vm3, %v3646_v20  ;;  %v2132_v20 = vrot.slane %v2130_v56, 5  ;;  %v2091_v56 = vsel %vm3916_vm4, %v2086_v53, %v4364_v11  ;;  %v2160_v11 = vshll.u32 %v4431_v43, 16  ;;  %v2164_v53 = vshrl.u32 %v4431_v43, 16 }
  0x7f   : > { %3377 = vmatprep.mubr.msk.bf16.mxu0 %vm475_vm3, %v3647_v1  ;;  %v2146_v1 = vshll.u32 %v4420_v21, 16  ;;  %v3119_v54 = vcombine.low %v2091_v56, %v2101_v4  ;;  %v2144_v56 = vrot.slane %v2143_v63, 4  ;;  %v4478_v63 = vld [vmem:[%s3877_s4 + $0x50] sm:$0x1] }
  0x80   : > { %3292 = vmatmul.mubr.msk.bf16.gmra.mrb[12].mxu1 %vm475_vm3, %v2916_v10  ;;  %v4417_v10 = vsel %vm4071_vm7, %v845_v61, %v846_v16  ;;  %v4442_v16 = vld [vmem:[%s3877_s4 + $0x4c] sm:$0xf]  ;;  %v2119_v61 = vor.u32 %v2118_v55, %v4409_v26  ;;  %v2133_v6 = vor.u32 %v2132_v20, %v2129_v44  ;;  %v2110_v55 = vrot.slane %v2109_v15, 4 }
  0x81   : > { %3297 = vmatprep.mubr.msk.bf16.mxu1 %vm475_vm3, %v2934_v41  ;;  %v3103_v41 = vld [vmem:[%s3877_s4 + $0x3c] sm:$0xf]  ;;  %v2184_v39 = vshll.u32 %v4442_v16, 16  ;;  %v2124_v44 = vrot.slane %v2122_v48, 5  ;;  %v2188_v20 = vshrl.u32 %v4442_v16, 16  ;;  %v2148_v33 = vrot.slane %v2146_v1, 5 }
  0x82   : > { %v2151_v49 = vshrl.u32 %v3103_v41, 16  ;;  %v2154_v13 = vshll.u32 %v3103_v41, 16  ;;  %v2120_v41 = vrot.slane %v2119_v61, 4  ;;  %v4466_v15 = vrot.slane %v2160_v11, 5 }
  0x83   : > { %v2166_v48 = vrot.slane %v2164_v53, 4  ;;  %v2199_v1 = vshrl.u32 %v3109_v57, 16  ;;  %v1370_v11 = vshll.u32 %v4192_v59, 16  ;;  %v2115_v53 = vsel %vm3916_vm4, %v2110_v55, %v4409_v26 }
  0x84   : > { %v2153_v25 = vrot.slane %v2151_v49, 4  ;;  %v2156_v4 = vrot.slane %v2154_v13, 5  ;;  %v4475_v49 = vrot.slane %v2184_v39, 5  ;;  %v2190_v13 = vrot.slane %v2188_v20, 4 }
  0x85   : > { %v2125_v52 = vsel %vm3916_vm4, %v2120_v41, %v2124_v44  ;;  %v2167_v57 = vor.u32 %v2166_v48, %v4466_v15  ;;  %v2149_v26 = vsel %vm3916_vm4, %v2144_v56, %v2148_v33  ;;  %v2201_v44 = vrot.slane %v2199_v1, 4  ;;  %v4516_v56 = vld [vmem:[%s3877_s4 + $0x5c] sm:$0x1] }
  0x86   : > { %3378 = vmatmul.mubr.msk.bf16.gmra.mrb[8].mxu0 %vm475_vm3, %v3648_v40  ;;  %v2134_v40 = vrot.slane %v2133_v6, 4  ;;  %v2157_v20 = vor.u32 %v2156_v4, %v2153_v25  ;;  %v2191_v41 = vor.u32 %v2190_v13, %v4475_v49  ;;  %v4839_v33 = vcombine.low %v4302_v2, %v4317_v9 }
  0x87   : > { %3381 = vmatprep.mubr.msk.bf16.mxu0 %vm475_vm3, %v3649_v18  ;;  %v3650_v18 = vld [vmem:[%s3877_s4 + $0x6c] sm:$0xff]   ;;  %v2223_v4 = vshrl.u32 %v3112_v7, 16  ;;  %v1374_v48 = vshrl.u32 %v4192_v59, 16  ;;  %v3120_v13 = vcombine.low %v2115_v53, %v2125_v52 }
  0x88   : > { %3298 = vmatmul.mubr.msk.bf16.vlgmr.msra.gmra.mrb[0].mxu1 %vm475_vm3, %v2935_v27  ;;  %v4463_v27 = vld [vmem:[%s3877_s4 + $0x58] sm:$0xf]  ;;  %v2139_v39 = vsel %vm3916_vm4, %v2134_v40, %v4422_v22  ;;  %v4838_v22 = vcombine.low %v4296_v58, %v4308_v23  ;;  %v2204_v40 = vrot.slane %v2202_v34, 5  ;;  %v2226_v58 = vshll.u32 %v3112_v7, 16 }
  0x89   : > { %3314 = vmatpush3.bf16.msra.mxu1 %v1101_v28  ;;  %3301 = vmatprep.mubr.msk.bf16.mxu1 %vm475_vm3, %v2936_v29  ;;  %v3659_v28 = vld [vmem:[%s4820_s1 + $0x8] sm:$0x3]  ;;  %v2180_v29 = vrot.slane %v2178_v37, 5  ;;  %v2208_v61 = vshll.u32 %v4463_v27, 16  ;;  %v2212_v6 = vshrl.u32 %v4463_v27, 16  ;;  %v2575_v37 = vsel %vm500_vm0, %v4350_v38, 0 }
  0x8a   : > { %3556 = vmatprep.subr.msk.bf16.mxu1 %vm500_vm0, %v3659_v28  ;;  %v2170_v28 = vshll.u32 %v4473_v46, 16  ;;  %v2194_v38 = vshll.u32 %v4478_v63, 16  ;;  %v2232_v23 = vshll.u32 %v4497_v60, 16  ;;  %v3121_v34 = vcombine.low %v2139_v39, %v2149_v26 }
  0x8b   : > { %v2181_v55 = vor.u32 %v2180_v29, %v2177_v50  ;;  %v4509_v25 = vrot.slane %v2208_v61, 5  ;;  %v2158_v50 = vrot.slane %v2157_v20, 4  ;;  %v2168_v29 = vrot.slane %v2167_v57, 4 }
  0x8c   : > { %v2172_v1 = vrot.slane %v2170_v28, 5  ;;  %v2196_v9 = vrot.slane %v2194_v38, 5  ;;  %v2192_v61 = vrot.slane %v2191_v41, 4  ;;  %v2218_v7 = vshll.u32 %v4516_v56, 16  ;;  %v4537_v28 = vld [vmem:[%s3877_s4 + $0x68] sm:$0x1] }
  0x8d   : > { %v2182_v2 = vrot.slane %v2181_v55, 4  ;;  %v2225_v35 = vrot.slane %v2223_v4, 4  ;;  %v4527_v59 = vrot.slane %v2232_v23, 5  ;;  %v4529_v57 = vrot.slane %v1370_v11, 5 }
  0x8e   : > { %3382 = vmatmul.mubr.msk.bf16.gmra.mrb[12].mxu0 %vm475_vm3, %v3650_v18  ;;  %v2214_v18 = vrot.slane %v2212_v6, 4  ;;  %v2205_v6 = vor.u32 %v2204_v40, %v2201_v44  ;;  %v1376_v53 = vrot.slane %v1374_v48, 4  ;;  %v2163_v52 = vsel %vm3916_vm4, %v2158_v50, %v4466_v15 }
  0x8f   : > { %3387 = vmatprep.mubr.msk.bf16.mxu0 %vm475_vm3, %v3119_v54  ;;  %v2236_v54 = vshrl.u32 %v4497_v60, 16  ;;  %v2228_v60 = vrot.slane %v2226_v58, 5  ;;  %v2173_v39 = vsel %vm3916_vm4, %v2168_v29, %v2172_v1  ;;  %v2256_v38 = vshll.u32 %v4525_v12, 16  ;;  %v3651_v1 = vld [vmem:[%s3877_s4 + $0xc] sm:$0xff]  }
  0x90   : > { %3302 = vmatmul.mubr.msk.bf16.gmra.mrb[4].mxu1 %vm475_vm3, %v4838_v22  ;;  %v2215_v22 = vor.u32 %v2214_v18, %v4509_v25  ;;  %v2260_v44 = vshrl.u32 %v4525_v12, 16  ;;  %v4840_v11 = vcombine.low %v4336_v47, %v4354_v51  ;;  %v2187_v15 = vsel %vm3916_vm4, %v2182_v2, %v4475_v49 }
  0x91   : > { %3305 = vmatprep.mubr.msk.bf16.mxu1 %vm475_vm3, %v4839_v33  ;;  %v3115_v33 = vld [vmem:[%s3877_s4 + $0x6c] sm:$0xf]  ;;  %v2238_v20 = vrot.slane %v2236_v54, 4  ;;  %v2197_v41 = vsel %vm3916_vm4, %v2192_v61, %v2196_v9  ;;  %v2206_v40 = vrot.slane %v2205_v6, 4  ;;  %v2220_v18 = vrot.slane %v2218_v7, 5 }
  0x92   : > { %v2247_v26 = vshrl.u32 %v3115_v33, 16  ;;  %v2250_v55 = vshll.u32 %v3115_v33, 16  ;;  %v4841_v4 = vcombine.low %v4375_v62, %v4387_v24  ;;  %v2216_v47 = vrot.slane %v2215_v22, 4  ;;  %v3000_v22 = vld [vmem:[%s3877_s4 + $0x48] sm:$0xf] }
  0x93   : > { %v2229_v51 = vor.u32 %v2228_v60, %v2225_v35  ;;  %v2242_v49 = vshll.u32 %v4537_v28, 16  ;;  %v1377_v58 = vor.u32 %v1376_v53, %v4529_v57  ;;  %v1380_v23 = vshll.u32 %v4195_v0, 16  ;;  %v4566_v60 = vld [vmem:[%s3877_s4 + $0x74] sm:$0x1] }
  0x94   : > { %v3122_v54 = vcombine.low %v2163_v52, %v2173_v39  ;;  %v2249_v48 = vrot.slane %v2247_v26, 4  ;;  %v2252_v62 = vrot.slane %v2250_v55, 5  ;;  %v4560_v24 = vrot.slane %v2256_v38, 5 }
  0x95   : > { %v2262_v50 = vrot.slane %v2260_v44, 4  ;;  %v3123_v29 = vcombine.low %v2187_v15, %v2197_v41  ;;  %v2211_v35 = vsel %vm3916_vm4, %v2206_v40, %v4509_v25  ;;  %v2230_v0 = vrot.slane %v2229_v51, 4  ;;  %v3653_v51 = vld [vmem:[%s3877_s4 + $0x24] sm:$0xff]  }
  0x96   : > { %3388 = vmatmul.mubr.msk.bf16.vlgmr.msra.gmra.mrb[0].mxu0 %vm475_vm3, %v3120_v13  ;;  %v2221_v13 = vsel %vm3916_vm4, %v2216_v47, %v2220_v18  ;;  %v2244_v2 = vrot.slane %v2242_v49, 5  ;;  %v1378_v9 = vrot.slane %v1377_v58, 4  ;;  %v1382_v61 = vrot.slane %v1380_v23, 5 }
  0x97   : > { %3404 = vmatpush3.bf16.msra.mxu0 %v2575_v37  ;;  %3391 = vmatprep.mubr.msk.bf16.mxu0 %vm475_vm3, %v3121_v34  ;;  %v2239_v37 = vor.u32 %v2238_v20, %v4527_v59  ;;  %v2470_v6 = vrot.slane %v4324_v31, 5  ;;  %v2253_v7 = vor.u32 %v2252_v62, %v2249_v48  ;;  %v2263_v33 = vor.u32 %v2262_v50, %v4560_v24  ;;  %v3135_v20 = vld [vmem:[%s3877_s4 + $0x18] sm:$0xe]  ;;  %v3137_v62 = vld [vmem:[%s3877_s4 + $0x30] sm:$0xe] }
  0x98   : > { %3306 = vmatmul.mubr.msk.bf16.gmra.mrb[8].mxu1 %vm475_vm3, %v4840_v11  ;;  %v2266_v25 = vshll.u32 %v4566_v60, 16  ;;  %v4842_v53 = vcombine.low %v4405_v19, %v4417_v10  ;;  %v3124_v52 = vcombine.low %v2211_v35, %v2221_v13  ;;  %v2235_v31 = vsel %vm3916_vm4, %v2230_v0, %v4527_v59  ;;  %v3652_v59 = vld [vmem:[%s3877_s4 + $0x18] sm:$0xff]  }
  0x99   : > { %3309 = vmatprep.mubr.msk.bf16.mxu1 %vm475_vm3, %v4841_v4  ;;  %v2240_v34 = vrot.slane %v2239_v37, 4  ;;  %v1361_v26 = vshrl.u32 %v3000_v22, 16  ;;  %v1364_v55 = vshll.u32 %v3000_v22, 16  ;;  %v3143_v19 = vrot.slane %v3135_v20, 9  ;;  %v2997_v4 = vld [vmem:[%s3877_s4 + $0x3c] sm:$0xf] }
  0x9a   : > { %v2472_v10 = vrot.slane %v2470_v6, 4  ;;  %v2473_v38 = vrot.slane %v4358_v30, 5  ;;  %v1383_v44 = vsel %vm3916_vm4, %v1378_v9, %v1382_v61  ;;  %v2254_v11 = vrot.slane %v2253_v7, 4  ;;  %v3136_v30 = vld [vmem:[%s3877_s4 + $0x24] sm:$0xe]  ;;  %v3654_v22 = vld [vmem:[%s3877_s4 + $0x30] sm:$0xff]  }
  0x9b   : > { %v2245_v39 = vsel %vm3916_vm4, %v2240_v34, %v2244_v2  ;;  %v2264_v15 = vrot.slane %v2263_v33, 4  ;;  %v2268_v41 = vrot.slane %v2266_v25, 5  ;;  %v1363_v40 = vrot.slane %v1361_v26, 4  ;;  %v3655_v20 = vld [vmem:[%s3877_s4 + $0x3c] sm:$0xff]   ;;  %v3003_v26 = vld [vmem:[%s3877_s4 + $0x54] sm:$0xf] }
  0x9c   : > { %v3125_v18 = vcombine.low %v2235_v31, %v2245_v39  ;;  %v1366_v47 = vrot.slane %v1364_v55, 5  ;;  %v2471_v37 = vsel %vm4071_vm7, %v3143_v19, %v2470_v6  ;;  %v2474_v49 = vsel %vm4071_vm7, %v2472_v10, %v2473_v38  ;;  %v3139_v38 = vld [vmem:[%s3877_s4 + $0x48] sm:$0xe] }
  0x9d   : > { %v2477_v58 = vrot.slane %v4371_v14, 5  ;;  %v2269_v48 = vsel %vm3916_vm4, %v2264_v15, %v2268_v41  ;;  %v2484_v50 = vrot.slane %v4390_v8, 5  ;;  %v1340_v35 = vshll.u32 %v2997_v4, 16 }
  0x9e   : > { %3392 = vmatmul.mubr.msk.bf16.gmra.mrb[4].mxu0 %vm475_vm3, %v3122_v54  ;;  %v1367_v23 = vor.u32 %v1366_v47, %v1363_v40  ;;  %v2259_v54 = vsel %vm3916_vm4, %v2254_v11, %v4560_v24  ;;  %v1346_v14 = vshll.u32 %v4174_v42, 16  ;;  %v3144_v24 = vrot.slane %v3136_v30, 9 }
  0x9f   : > { %3395 = vmatprep.mubr.msk.bf16.mxu0 %vm475_vm3, %v3123_v29  ;;  %v1337_v29 = vshrl.u32 %v2997_v4, 16  ;;  %v2480_v8 = vrot.slane %v4413_v36, 5  ;;  %v3152_v0 = vcombine.low %v2471_v37, %v2474_v49  ;;  %v2479_v34 = vrot.slane %v2477_v58, 4  ;;  %v3656_v37 = vld [vmem:[%s3877_s4 + $0x48] sm:$0xff]  }
  0xa0   : > { %3310 = vmatmul.mubr.msk.bf16.gmra.mrb[12].mxu1 %vm475_vm3, %v4842_v53  ;;  %v1368_v13 = vrot.slane %v1367_v23, 4  ;;  %v3145_v2 = vrot.slane %v3137_v62, 9  ;;  %v3126_v61 = vcombine.low %v2259_v54, %v2269_v48  ;;  %v2486_v6 = vrot.slane %v2484_v50, 4  ;;  %v3657_v23 = vld [vmem:[%s3877_s4 + $0x54] sm:$0xff]  }
  0xa1   : > { %3315 = vmatprep.mubr.msk.bf16.mxu1 %vm475_vm3, %v3651_v1  ;;  %v1350_v1 = vshrl.u32 %v4174_v42, 16  ;;  %v2487_v42 = vrot.slane %v4420_v21, 5  ;;  %v1339_v7 = vrot.slane %v1337_v29, 4  ;;  %v1342_v33 = vrot.slane %v1340_v35, 5 }
  0xa2   : > { %v1373_v9 = vsel %vm3916_vm4, %v1368_v13, %v4529_v57  ;;  %v4622_v25 = vrot.slane %v1346_v14, 5  ;;  %v2478_v53 = vsel %vm4071_vm7, %v3144_v24, %v2477_v58  ;;  %v2481_v57 = vsel %vm4071_vm7, %v2479_v34, %v2480_v8  ;;  %v3140_v24 = vld [vmem:[%s3877_s4 + $0x54] sm:$0xe]  ;;  %v4843_v8 = vld [vmem:[#allocation8_spill] sm:$0xff] }
  0xa3   : > { %v1352_v36 = vrot.slane %v1350_v1, 4  ;;  %v2485_v21 = vsel %vm4071_vm7, %v3145_v2, %v2484_v50  ;;  %v2491_v31 = vrot.slane %v4431_v43, 5  ;;  %v1356_v39 = vshll.u32 %v4177_v45, 16  ;;  %v3006_v50 = vld [vmem:[%s3877_s4 + $0x60] sm:$0xf] }
  0xa4   : > { %v2488_v55 = vsel %vm4071_vm7, %v2486_v6, %v2487_v42  ;;  %v1343_v19 = vor.u32 %v1342_v33, %v1339_v7  ;;  %v3153_v43 = vcombine.low %v2478_v53, %v2481_v57  ;;  %v2494_v11 = vrot.slane %v4473_v46, 5  ;;  %v4845_v33 = vld [vmem:[#allocation5_spill] sm:$0xff] }
  0xa5   : > { %v1353_v10 = vor.u32 %v1352_v36, %v4622_v25  ;;  %v1385_v15 = vshrl.u32 %v3003_v26, 16  ;;  %v1388_v41 = vshll.u32 %v3003_v26, 16  ;;  %v1394_v40 = vshll.u32 %v4203_v17, 16 }
  0xa6   : > { %3396 = vmatmul.mubr.msk.bf16.gmra.mrb[8].mxu0 %vm475_vm3, %v3124_v52  ;;  %v3138_v52 = vld [vmem:[%s3877_s4 + $0x3c] sm:$0xe]  ;;  %v2493_v4 = vrot.slane %v2491_v31, 4  ;;  %v1358_v47 = vrot.slane %v1356_v39, 5  ;;  %v2501_v58 = vrot.slane %v4478_v63, 5  ;;  %v2505_v63 = vrot.slane %v4463_v27, 5 }
  0xa7   : > { %3399 = vmatprep.mubr.msk.bf16.mxu0 %vm475_vm3, %v3125_v18  ;;  %v3146_v45 = vrot.slane %v3138_v52, 9  ;;  %v3154_v18 = vcombine.low %v2485_v21, %v2488_v55  ;;  %v1354_v49 = vrot.slane %v1353_v10, 4  ;;  %v1387_v46 = vrot.slane %v1385_v15, 4  ;;  %v3141_v27 = vld [vmem:[%s3877_s4 + $0x60] sm:$0xe] }
  0xa8   : > { %3316 = vmatmul.mubr.msk.bf16.vlgmr.msra.gmra.mrb[0].mxu1 %vm475_vm3, %v3652_v59  ;;  %v1398_v59 = vshrl.u32 %v4203_v17, 16  ;;  %v1390_v54 = vrot.slane %v1388_v41, 5  ;;  %v1396_v48 = vrot.slane %v1394_v40, 5  ;;  %v2495_v29 = vsel %vm4071_vm7, %v2493_v4, %v2494_v11  ;;  %v3658_v52 = vld [vmem:[%s3877_s4 + $0x60] sm:$0xff]  }
  0xa9   : > { %3422 = vmatpush3.bf16.msra.mxu1 %v3861_v3  ;;  %3319 = vmatprep.mubr.msk.bf16.mxu1 %vm475_vm3, %v3653_v51  ;;  %v4619_v3 = vcombine.low %v1373_v9, %v1383_v44  ;;  %v2498_v44 = vrot.slane %v4442_v16, 5  ;;  %v3147_v51 = vrot.slane %v3139_v38, 9  ;;  %v1344_v16 = vrot.slane %v1343_v19, 4  ;;  %v4844_v9 = vld [vmem:[#allocation6_spill] sm:$0xff] }
  0xaa   : > { %v1400_v62 = vrot.slane %v1398_v59, 4  ;;  %v2492_v17 = vsel %vm4071_vm7, %v3146_v45, %v2491_v31  ;;  %v1359_v1 = vsel %vm3916_vm4, %v1354_v49, %v1358_v47  ;;  %v1409_v34 = vshrl.u32 %v3006_v50, 16  ;;  %v3142_v47 = vld [vmem:[%s3877_s4 + $0x6c] sm:$0xe]  ;;  %s3664_s4 = sshll.u32 %s3756_s28, 4  ;;  %s3665_s4 = int_to_ptr.vmem [resolvable:$false] %s3664_s4 }
  0xab   : > { %v2500_v30 = vrot.slane %v2498_v44, 4  ;;  %v2499_v35 = vsel %vm4071_vm7, %v3147_v51, %v2498_v44  ;;  %v1349_v14 = vsel %vm3916_vm4, %v1344_v16, %v4622_v25  ;;  %v1412_v2 = vshll.u32 %v3006_v50, 16  ;;  %s3666_s5 = scalar_lea.vmem %s3665_s4, 4096  ;;  %p3667_p2 = scmp.lt.s32.totalorder %s4760_s16, %s3665_s4 }
  0xac   : > { %v1422_v6 = vshrl.u32 %v4844_v9, 16  ;;  %v3155_v42 = vcombine.low %v2492_v17, %v2495_v29  ;;  %v1401_v7 = vor.u32 %v1400_v62, %v1396_v48  ;;  %v1404_v25 = vshll.u32 %v4845_v33, 16  ;;  %p3668_p4 = scmp.lt.s32.totalorder %s3666_s5, %s3660_s27 }
  0xad   : > { %v2502_v13 = vsel %vm4071_vm7, %v2500_v30, %v2501_v58  ;;  %v2507_v53 = vrot.slane %v2505_v63, 4  ;;  %v2508_v57 = vrot.slane %v4516_v56, 5  ;;  %v3014_v21 = vcombine.low %v1349_v14, %v1359_v1 }
  0xae   : > { %3400 = vmatmul.mubr.msk.bf16.gmra.mrb[12].mxu0 %vm475_vm3, %v3126_v61  ;;  %v1418_v61 = vshll.u32 %v4844_v9, 16  ;;  %v3156_v36 = vcombine.low %v2499_v35, %v2502_v13  ;;  %v3149_v31 = vrot.slane %v3141_v27, 9  ;;  %v2515_v26 = vrot.slane %v4537_v28, 5  ;;  %p3669_p5 = por %p3668_p4, %p3667_p2 }
  0xaf   : > { %3405 = vmatprep.mubr.msk.bf16.mxu0 %vm475_vm3, %v3152_v0  ;;  %v2512_v0 = vrot.slane %v4843_v8, 5  ;;  %v1411_v55 = vrot.slane %v1409_v34, 4  ;;  %v1414_v19 = vrot.slane %v1412_v2, 5  ;;  %v1424_v38 = vrot.slane %v1422_v6, 4 }
  0xb0   : > { %3320 = vmatmul.mubr.msk.bf16.gmra.mrb[4].mxu1 %vm475_vm3, %v3654_v22  ;;  %v1391_v22 = vor.u32 %v1390_v54, %v1387_v46  ;;  %v1420_v10 = vrot.slane %v1418_v61, 5  ;;  %v1406_v45 = vrot.slane %v1404_v25, 5  ;;  %v2509_v28 = vsel %vm4071_vm7, %v2507_v53, %v2508_v57  ;;  %p3670_p6 = pnand %p3669_p5, %p3663_p1 }
  0xb1   : > { %3323 = vmatprep.mubr.msk.bf16.mxu1 %vm475_vm3, %v3655_v20  ;;  %v3148_v20 = vrot.slane %v3140_v24, 9  ;;  %v2514_v39 = vrot.slane %v2512_v0, 4  ;;  %v2513_v11 = vsel %vm4071_vm7, %v3149_v31, %v2512_v0  ;;  %v2519_v15 = vrot.slane %v4525_v12, 5 }
  0xb2   : > { %v1392_v44 = vrot.slane %v1391_v22, 4  ;;  %v1415_v40 = vor.u32 %v1414_v19, %v1411_v55  ;;  %v1425_v59 = vor.u32 %v1424_v38, %v1420_v10  ;;  %v3150_v30 = vrot.slane %v3142_v47, 9 }
  0xb3   : > { %v2506_v56 = vsel %vm4071_vm7, %v3148_v20, %v2505_v63  ;;  %v2516_v41 = vsel %vm4071_vm7, %v2514_v39, %v2515_v26  ;;  %v2521_v12 = vrot.slane %v2519_v15, 4  ;;  %v2522_v58 = vrot.slane %v4566_v60, 5 }
  0xb4   : > { %v1397_v51 = vsel %vm3916_vm4, %v1392_v44, %v1396_v48  ;;  %v3157_v16 = vcombine.low %v2506_v56, %v2509_v28  ;;  %v3158_v49 = vcombine.low %v2513_v11, %v2516_v41  ;;  %v1416_v46 = vrot.slane %v1415_v40, 4 }
  0xb5   : > { %v1426_v54 = vrot.slane %v1425_v59, 4  ;;  %v2520_v48 = vsel %vm4071_vm7, %v3150_v30, %v2519_v15  ;;  %v2523_v50 = vsel %vm4071_vm7, %v2521_v12, %v2522_v58 }
  0xb6   : > { %3406 = vmatmul.mubr.msk.bf16.vlgmr.msra.gmra.mrb[0].mxu0 %vm475_vm3, %v3153_v43  ;;  %v1402_v43 = vrot.slane %v1401_v7, 4  ;;  %v1421_v60 = vsel %vm3916_vm4, %v1416_v46, %v1420_v10  ;;  %v3159_v29 = vcombine.low %v2520_v48, %v2523_v50 }
  0xb7   : > { %3409 = vmatprep.mubr.msk.bf16.mxu0 %vm475_vm3, %v3154_v18  ;;  %v4846_v18 = vld [vmem:[#allocation7_spill] sm:$0xff] }
  0xb8   : > { %3324 = vmatmul.mubr.msk.bf16.gmra.mrb[8].mxu1 %vm475_vm3, %v3656_v37  ;;  %v1428_v4 = vshll.u32 %v4846_v18, 16  ;;  %v1407_v37 = vsel %vm3916_vm4, %v1402_v43, %v1406_v45 }
  0xb9   : > { %3327 = vmatprep.mubr.msk.bf16.mxu1 %vm475_vm3, %v3657_v23  ;;  %v3016_v23 = vcombine.low %v1397_v51, %v1407_v37 }
  0xba   : > { %v1430_v62 = vrot.slane %v1428_v4, 5 }
  0xbc   : > { %v1431_v17 = vsel %vm3916_vm4, %v1426_v54, %v1430_v62 }
  0xbe   : > { %3410 = vmatmul.mubr.msk.bf16.gmra.mrb[4].mxu0 %vm475_vm3, %v3155_v42 }
  0xbf   : > { %3413 = vmatprep.mubr.msk.bf16.mxu0 %vm475_vm3, %v3156_v36 }
  0xc0   : > { %3328 = vmatmul.mubr.msk.bf16.gmra.mrb[12].mxu1 %vm475_vm3, %v3658_v52 }
  0xc1   : > { %3341 = vmatprep.mubr.msk.bf16.mxu1 %vm475_vm3, %v3014_v21 }
  0xc6   : > { %3414 = vmatmul.mubr.msk.bf16.gmra.mrb[8].mxu0 %vm475_vm3, %v3157_v16 }
  0xc7   : > { %3417 = vmatprep.mubr.msk.bf16.mxu0 %vm475_vm3, %v3158_v49 }
  0xc8   : > { %3342 = vmatmul.mubr.msk.bf16.vlgmr.msra.gmra.mrb[8].mxu1 %vm475_vm3, %v4619_v3  ;;  %v3017_v3 = vcombine.low %v1421_v60, %v1431_v17 }
  0xc9   : > { %3345 = vmatprep.mubr.msk.bf16.mxu1 %vm475_vm3, %v3016_v23 }
  0xce   : > { %3418 = vmatmul.mubr.msk.bf16.gmra.mrb[12].mxu0 %vm475_vm3, %v3159_v29 }
  0xd0   : > { %3346 = vmatmul.mubr.msk.bf16.gmra.mrb[12].mxu1 %vm475_vm3, %v3017_v3 }
 0x17b   : > { %v3317_v35 = vpop.f32.mrb[0].mxu1 }
 0x17c   : > { %v1137_v63 = vpop.f32.mrb[1].mxu1 }
 0x17d   : > { %v3318_v5 = vpop.f32.mrb[2].mxu1 }
 0x17e   : > { %v1140_v14 = vpop.f32.mrb[3].mxu1 }
 0x183   : > { %v3321_v1 = vpop.f32.mrb[4].mxu1 }
 0x184   : > { %v1153_v13 = vpop.f32.mrb[5].mxu1 }
 0x185   : > { %v3322_v24 = vpop.f32.mrb[6].mxu1 }
 0x186   : > { %v1156_v8 = vpop.f32.mrb[7].mxu1 }
 0x189   : > { %v3407_v0 = vpop.f32.mrb[0].mxu0 }
 0x18a   : > { %v3423_v27 = vadd.f32 %v3407_v0, %v3317_v35  ;;  %v2611_v34 = vpop.f32.mrb[1].mxu0 }
 0x18b   : > { %v3424_v2 = vadd.f32 %v2611_v34, %v1137_v63  ;;  %v3408_v9 = vpop.f32.mrb[2].mxu0 }
 0x18c   : > { %v2699_v61 = vadd.f32 %v3423_v27, %v4717_v32  ;;  %v3425_v6 = vadd.f32 %v3408_v9, %v3318_v5  ;;  %v2614_v42 = vpop.f32.mrb[3].mxu0 }
 0x18d   : > { %v2697_v22 = vadd.f32 %v3424_v2, %v4717_v32  ;;  %v3426_v7 = vadd.f32 %v2614_v42, %v1140_v14 }
 0x18e   : > { %v2715_v33 = vmax.f32 %v2699_v61, 0.0  ;;  %v2700_v25 = vadd.f32 %v3425_v6, %v4717_v32 }
 0x18f   : > { %v2713_v36 = vmax.f32 %v2697_v22, 0.0  ;;  %v2698_v20 = vadd.f32 %v3426_v7, %v4717_v32 }
 0x190   : > { %2731 = vst [vmem:[%s4725_s7 + $0x10] sm:$0xff] %v2715_v33  ;;  %v2716_v53 = vmax.f32 %v2700_v25, 0.0 }
 0x191   : > { %2729 = vst [vmem:[%s4725_s7] sm:$0xff] %v2713_v36  ;;  %v2714_v57 = vmax.f32 %v2698_v20, 0.0  ;;  %v3411_v52 = vpop.f32.mrb[4].mxu0 }
 0x192   : > { %2732 = vst [vmem:[%s4725_s7 + $0x18] sm:$0xff] %v2716_v53  ;;  %v3427_v21 = vadd.f32 %v3411_v52, %v3321_v1  ;;  %v2627_v31 = vpop.f32.mrb[5].mxu0 }
 0x193   : > { %2730 = vst [vmem:[%s4725_s7 + $0x8] sm:$0xff] %v2714_v57  ;;  %v3428_v39 = vadd.f32 %v2627_v31, %v1153_v13  ;;  %v3412_v26 = vpop.f32.mrb[6].mxu0 }
 0x194   : > { %v2703_v55 = vadd.f32 %v3427_v21, %v4717_v32  ;;  %v3429_v19 = vadd.f32 %v3412_v26, %v3322_v24  ;;  %v2630_v10 = vpop.f32.mrb[7].mxu0 }
 0x195   : > { %v2701_v38 = vadd.f32 %v3428_v39, %v4717_v32  ;;  %v3430_v44 = vadd.f32 %v2630_v10, %v1156_v8 }
 0x196   : > { %v2719_v43 = vmax.f32 %v2703_v55, 0.0  ;;  %v2704_v45 = vadd.f32 %v3429_v19, %v4717_v32 }
 0x197   : > { %v2717_v56 = vmax.f32 %v2701_v38, 0.0  ;;  %v2702_v28 = vadd.f32 %v3430_v44, %v4717_v32 }
 0x198   : > { %2735 = vst [vmem:[%s4725_s7 + $0x30] sm:$0xff] %v2719_v43  ;;  %v2720_v11 = vmax.f32 %v2704_v45, 0.0 }
 0x199   : > { %2733 = vst [vmem:[%s4725_s7 + $0x20] sm:$0xff] %v2717_v56  ;;  %v2718_v15 = vmax.f32 %v2702_v28, 0.0  ;;  %v3415_v41 = vpop.f32.mrb[8].mxu0 }
 0x19a   : > { %2736 = vst [vmem:[%s4725_s7 + $0x38] sm:$0xff] %v2720_v11  ;;  %v2643_v59 = vpop.f32.mrb[9].mxu0 }
 0x19b   : > { %v3343_v40 = vpop.f32.mrb[8].mxu1  ;;  %2734 = vst [vmem:[%s4725_s7 + $0x28] sm:$0xff] %v2718_v15  ;;  %v3416_v47 = vpop.f32.mrb[10].mxu0 }
 0x19c   : > { %v3431_v18 = vadd.f32 %v3415_v41, %v3343_v40  ;;  %v1551_v4 = vpop.f32.mrb[9].mxu1  ;;  %v2646_v16 = vpop.f32.mrb[11].mxu0 }
 0x19d   : > { %v3432_v51 = vadd.f32 %v2643_v59, %v1551_v4  ;;  %v3344_v37 = vpop.f32.mrb[10].mxu1 }
 0x19e   : > { %v2707_v49 = vadd.f32 %v3431_v18, %v4717_v32  ;;  %v3433_v30 = vadd.f32 %v3416_v47, %v3344_v37  ;;  %v1554_v12 = vpop.f32.mrb[11].mxu1 }
 0x19f   : > { %v2705_v58 = vadd.f32 %v3432_v51, %v4717_v32  ;;  %v3434_v23 = vadd.f32 %v2646_v16, %v1554_v12 }
 0x1a0   : > { %v2723_v46 = vmax.f32 %v2707_v49, 0.0  ;;  %v2708_v54 = vadd.f32 %v3433_v30, %v4717_v32 }
 0x1a1   : > { %v2721_v62 = vmax.f32 %v2705_v58, 0.0  ;;  %v2706_v48 = vadd.f32 %v3434_v23, %v4717_v32  ;;  %v3419_v60 = vpop.f32.mrb[12].mxu0 }
 0x1a2   : > { %2739 = vst [vmem:[%s4725_s7 + $0x50] sm:$0xff] %v2723_v46  ;;  %v2724_v50 = vmax.f32 %v2708_v54, 0.0  ;;  %v2659_v3 = vpop.f32.mrb[13].mxu0 }
 0x1a3   : > { %2737 = vst [vmem:[%s4725_s7 + $0x40] sm:$0xff] %v2721_v62  ;;  %v2722_v17 = vmax.f32 %v2706_v48, 0.0  ;;  %v3347_v29 = vpop.f32.mrb[12].mxu1  ;;  %v3420_v5 = vpop.f32.mrb[14].mxu0 }
 0x1a4   : > { %2740 = vst [vmem:[%s4725_s7 + $0x58] sm:$0xff] %v2724_v50  ;;  %v3435_v35 = vadd.f32 %v3419_v60, %v3347_v29  ;;  %v1567_v63 = vpop.f32.mrb[13].mxu1  ;;  %v2662_v13 = vpop.f32.mrb[15].mxu0 }
 0x1a5   : > { %2738 = vst [vmem:[%s4725_s7 + $0x48] sm:$0xff] %v2722_v17  ;;  %v3436_v14 = vadd.f32 %v2659_v3, %v1567_v63  ;;  %v3348_v1 = vpop.f32.mrb[14].mxu1 }
 0x1a6   : > { %v2711_v24 = vadd.f32 %v3435_v35, %v4717_v32  ;;  %v3437_v8 = vadd.f32 %v3420_v5, %v3348_v1  ;;  %v1570_v0 = vpop.f32.mrb[15].mxu1 }
 0x1a7   : > { %v2709_v27 = vadd.f32 %v3436_v14, %v4717_v32  ;;  %v3438_v34 = vadd.f32 %v2662_v13, %v1570_v0 }
 0x1a8   : > { %v2727_v2 = vmax.f32 %v2711_v24, 0.0  ;;  %v2712_v9 = vadd.f32 %v3437_v8, %v4717_v32 }
 0x1a9   : > { %v2725_v61 = vmax.f32 %v2709_v27, 0.0  ;;  %v2710_v6 = vadd.f32 %v3438_v34, %v4717_v32 }
 0x1aa   : > { %2743 = vst [vmem:[%s4725_s7 + $0x70] sm:$0xff] %v2727_v2  ;;  %v2728_v42 = vmax.f32 %v2712_v9, 0.0 }
 0x1ab   : > { %2741 = vst [vmem:[%s4725_s7 + $0x60] sm:$0xff] %v2725_v61  ;;  %v2726_v22 = vmax.f32 %v2710_v6, 0.0 }
 0x1ac   : > { %2744 = vst [vmem:[%s4725_s7 + $0x78] sm:$0xff] %v2728_v42 }
 0x1ad   : > { %2742 = vst [vmem:[%s4725_s7 + $0x68] sm:$0xff] %v2726_v22 }
 0x1ae   : > { %3673 = shalt.err (!%p3670_p6)
}
 0x1af   : > { %s3674_s29 = scalar_lea.hbm %s4758_s21, 2048  ;;  %s3678_s8 = scalar_lea.hbm %s4822_s3, 8192 }
 0x1b0   : > { %p3675_p7 = scmp.ne.s32.totalorder %s4758_s21, %s3674_s29  ;;  %p3679_p11 = scmp.lt.u32.totalorder %s4758_s21, %s4822_s3 }
 0x1b1   : > { %p3680_p12 = scmp.lt.u32.totalorder %s3678_s8, %s3674_s29  ;;  %p3682_p0 = scmp.lt.u32.totalorder %s3674_s29, %s4758_s21 }
 0x1b2   : > { %p3676_p9 = pnand %p3675_p7, %p3830_p3 }
 0x1b3   : > { %p3681_p13 = por %p3680_p12, %p3679_p11 }
 0x1b4   : > { %p3677_p10 = pneg %p3676_p9 }
 0x1b5   : > { %p3683_p1 = por %p3682_p0, %p3681_p13 }
 0x1b7   : > { %p3684_p2 = pnand %p3683_p1, %p3677_p10 }
 0x1b9   : > { %3687 = shalt.err (!%p3684_p2)
}
 0x1ba   : > { %s3757_s15 = smov 128   ;;  %s3758_s11 = smov 8  }
 0x1bb   : > { %3562 = dma.vmem_to_hbm [thread:$0]  (%p3830_p3), %s4760_s16, 2048, %s4758_s21, %s4767_s24, %s3757_s15, %s3757_s15, %s3758_s11  }
 0x1bc PF: > { %p3568_p4 = scmp.ge.s32.totalorder %s3754_s19, 2  ;;  %s2778_s20 = sand.u32 1, %s3726_s12  }
 0x1bd   : > { %s2779_s27 = scalar_lea.sflag [#allocation3], %s2778_s20 }
 0x1be   : > { %p3565_p5 = pnand %p3568_p4, %p3839_p8 }
 0x1c0   : > { %3721 = dma.done.wait (!%p3565_p5), %s2779_s27, 2048  }
 0x1c1   : > { %3723 = vsyncadd (!%p3565_p5), %s2779_s27, 4294965248  ;;  %s16_s19 = sadd.s32 1, %s3754_s19   ;;  %s4847_s12 = smov %s3730_s13 }
 0x1c2   : > { %p13_p6 = scmp.ge.s32.totalorder %s16_s19, 6   ;;  %s4848_s13 = smov %s3734_s14 }
 0x1c3   : > { %s4849_s14 = smov %s3848_s30  ;;  %s4850_s15 = smov %s3746_s17 }
 0x1c4   : > { %s4851_s16 = smov %s3750_s18  ;;  %s4852_s17 = smov %s4855_s22 }
 0x1c5   : > { %s4853_s18 = smov %s4859_s23  ;;  %15 = sbr.rel (!%p13_p6) target bundleno = 5 (0x5), region = 84 }
 0x1cc   :  { %2784 = vsyncpa [#allocation3], 1 }
 0x1cd   :  { %2786 = vsyncpa [#allocation3 + $0x1], 1 }

</bundles_post_ra>
